<compile_context>
chip_gen: v7x
topology: tpu7x:2x2x1
jax: 0.10.0
libtpu: 0.0.40
codegen_flags: <defaults>
</compile_context>

<pallas_src>
import functools

import jax
import jax.numpy as jnp
from jax import lax
from jax.experimental import pallas as pl
from jax.experimental.pallas import tpu as pltpu


ENCODING_DIM = 32
INPUT_DIM = 32
PAD = 128        # lane-dense padded width for hidden layers
SUB = 128        # inner row sub-tile (128x128 MXU-friendly; safe on v5e/v6e/v7x)
TM_MAX = 1024    # max batch-row tile per grid step


def _round_up(n, m):
    return ((n + m - 1) // m) * m


def _layer_dims(encoding_dim, input_dim):
    # (in, out) for each of the 8 Linear layers, exactly as in the torch module.
    enc = [
        (input_dim, encoding_dim * 4),
        (input_dim * 4, encoding_dim * 3),
        (encoding_dim * 3, encoding_dim * 2),
        (encoding_dim * 2, encoding_dim),
    ]
    dec = [
        (encoding_dim, encoding_dim * 2),
        (input_dim * 2, encoding_dim * 3),
        (encoding_dim * 3, encoding_dim * 4),
        (encoding_dim * 4, input_dim),
    ]
    return enc + dec


def _init_params(key, encoding_dim, input_dim, dtype=jnp.float32):
    """PyTorch-style uniform(-1/sqrt(fan_in), 1/sqrt(fan_in)); W stored as (in, out)."""
    params = []
    for (fan_in, fan_out) in _layer_dims(encoding_dim, input_dim):
        key, kw, kb = jax.random.split(key, 3)
        bound = 1.0 / jnp.sqrt(jnp.asarray(fan_in, dtype))
        w = jax.random.uniform(kw, (fan_in, fan_out), dtype, -bound, bound)
        b = jax.random.uniform(kb, (1, fan_out), dtype, -bound, bound)
        params.append((w, b))
    return params


def _pad_params(params):
    """Zero-pad hidden widths to PAD lanes; leave the 32-wide input edge of the
    first layer and the 32-wide output edge of the last layer unpadded so x/out
    HBM traffic stays at 32 lanes.  Weights -> bf16 (MXU operand), biases -> f32."""
    n_layers = len(params)
    flat = []
    for i, (w, b) in enumerate(params):
        in_w = w.shape[0] if i == 0 else PAD
        out_w = w.shape[1] if i == n_layers - 1 else PAD
        wp = jnp.zeros((in_w, out_w), jnp.float32).at[: w.shape[0], : w.shape[1]].set(w)
        bp = jnp.zeros((1, out_w), jnp.float32).at[:, : b.shape[1]].set(b)
        flat.append(wp.astype(jnp.bfloat16))   # MXU operand (bf16)
        flat.append(bp)                        # bias stays f32
    return flat


def _autoencoder_kernel(x_ref, *refs):
    """refs = (w1, b1, ..., w8, b8, out_ref).  x_ref is (tm, 32) bf16,
    out_ref is (tm, 32) f32, hidden activations are 128 lanes wide."""
    out_ref = refs[-1]
    p = refs[:-1]
    n_layers = len(p) // 2

    # Hoist the 8 bias loads out of the sub-tile loop (JAX does not CSE these).
    biases = [p[2 * li + 1][...] for li in range(n_layers)]

    tm = x_ref.shape[0]
    sub = min(SUB, tm)
    n_sub = tm // sub

    def body(s, carry):
        r0 = pl.multiple_of(s * sub, sub)
        h = x_ref[pl.ds(r0, sub), :]                      # bf16 (sub, 32)
        for li in range(n_layers):
            w = p[2 * li][...]                            # bf16 weight
            h = jnp.dot(h, w, preferred_element_type=jnp.float32)
            h = jnp.maximum(h + biases[li], 0.0)          # f32 bias + ReLU(inplace)
            if li < n_layers - 1:
                h = h.astype(jnp.bfloat16)                # next MXU operand
        out_ref[pl.ds(r0, sub), :] = h.astype(out_ref.dtype)
        return carry

    # unroll=2 keeps at most ~2 live activation chains (no vreg spills).
    lax.fori_loop(0, n_sub, body, 0, unroll=min(2, n_sub))


def _choose_tile(n8):
    """Pick (tm, n_pad).  tm is a multiple of SUB (or == n8 when n8 <= SUB).
    Preference order: minimal zero-row padding, then >=2 grid steps (so v7x's
    two TensorCores both get work on the 'parallel' axis), then fewest steps
    (amortize ~0.35us per-step overhead on v5e/v6e)."""
    if n8 <= SUB:
        return n8, n8
    n128 = _round_up(n8, SUB)
    best = None
    for tm in range(SUB, min(TM_MAX, n128) + 1, SUB):
        n_pad = _round_up(n8, tm)
        steps = n_pad // tm
        key = (n_pad - n128, 0 if steps >= 2 else 1, steps)
        if best is None or key < best[0]:
            best = (key, tm, n_pad)
    return best[1], best[2]


@functools.partial(jax.jit, static_argnames=("input_dim",))
def autoencoder_forward(x, params_flat, *, input_dim):
    # Flatten like torch's x.view(-1, input_dim); no column padding.
    x2d = x.reshape(-1, input_dim)
    n = x2d.shape[0]
    out_dim = params_flat[-1].shape[-1]

    n8 = _round_up(max(n, 1), 8)
    tm, n_pad = _choose_tile(n8)

    # bf16 activations into the kernel: lossless here (the math casts the
    # activation to bf16 before every matmul anyway) and halves input DMA bytes.
    x_pad = jnp.pad(x2d.astype(jnp.bfloat16), ((0, n_pad - n), (0, 0)))

    grid = (n_pad // tm,)

    # x / out tiled over batch rows; every weight/bias is a single full-array
    # block resident in VMEM across grid steps (constant index map).
    # NOTE: pl.Buffered(1) on the weight specs would shave a little VMEM, but the
    # total weight footprint is <0.6 MiB even double-buffered, so it is omitted.
    in_specs = [pl.BlockSpec((tm, input_dim), lambda i: (i, 0))]
    for prm in params_flat:
        in_specs.append(pl.BlockSpec(prm.shape, lambda i: (0, 0)))
    out_spec = pl.BlockSpec((tm, out_dim), lambda i: (i, 0))

    layer_shapes = [w.shape for w in params_flat[0::2]]
    flops = 2 * n_pad * sum(int(i) * int(o) for (i, o) in layer_shapes)
    param_bytes = sum(int(prm.size) * jnp.dtype(prm.dtype).itemsize
                      for prm in params_flat)
    bytes_accessed = n_pad * input_dim * 2 + n_pad * out_dim * 4 + param_bytes

    out = pl.pallas_call(
        _autoencoder_kernel,
        out_shape=jax.ShapeDtypeStruct((n_pad, out_dim), jnp.float32),
        grid_spec=pltpu.PrefetchScalarGridSpec(
            num_scalar_prefetch=0,
            grid=grid,
            in_specs=in_specs,
            out_specs=out_spec,
        ),
        compiler_params=pltpu.CompilerParams(
            dimension_semantics=("parallel",),
        ),
        cost_estimate=pl.CostEstimate(
            flops=flops, transcendentals=0, bytes_accessed=bytes_accessed),
    )(x_pad, *params_flat)

    # Only padded rows to drop (columns are already exactly input_dim wide).
    return out[:n, :]


def reference_forward(x, params, *, input_dim):
    """Same math as the kernel (bf16 MXU operands, f32 accumulate/bias/ReLU)."""
    h = x.reshape(-1, input_dim).astype(jnp.float32)
    for w, b in params:
        h = jnp.dot(h.astype(jnp.bfloat16), w.astype(jnp.bfloat16),
                    preferred_element_type=jnp.float32) + b
        h = jnp.maximum(h, 0.0)
    return h


if __name__ == "__main__":
    key = jax.random.PRNGKey(0)
    k_param, k_x = jax.random.split(key)

    params = _init_params(k_param, ENCODING_DIM, INPUT_DIM)
    params_flat = _pad_params(params)

    # Small deterministic input; forward flattens it to (-1, 32) = (320, 32),
    # exercising row padding (320 -> 384) and a 3-step parallel grid.
    x = jax.random.normal(k_x, (2, 4, 40, INPUT_DIM), dtype=jnp.float32)

    out = autoencoder_forward(x, params_flat, input_dim=INPUT_DIM)
    out = jax.block_until_ready(out)

    ref = reference_forward(x, params, input_dim=INPUT_DIM)
    assert out.shape == (320, INPUT_DIM), out.shape
    max_err = float(jnp.max(jnp.abs(out - ref)))
    assert jnp.allclose(out, ref, atol=2e-3, rtol=2e-3), max_err

    print("KERNEL_OK")
</pallas_src>

<mosaic_0001>
module attributes {stable_mosaic.version = 11 : i64} {
  func.func @_autoencoder_kernel(%arg0: i32, %arg1: memref<128x32xbf16, #tpu.memory_space<vmem>>, %arg2: memref<32x128xbf16, #tpu.memory_space<vmem>>, %arg3: memref<1x128xf32, #tpu.memory_space<vmem>>, %arg4: memref<128x128xbf16, #tpu.memory_space<vmem>>, %arg5: memref<1x128xf32, #tpu.memory_space<vmem>>, %arg6: memref<128x128xbf16, #tpu.memory_space<vmem>>, %arg7: memref<1x128xf32, #tpu.memory_space<vmem>>, %arg8: memref<128x128xbf16, #tpu.memory_space<vmem>>, %arg9: memref<1x128xf32, #tpu.memory_space<vmem>>, %arg10: memref<128x128xbf16, #tpu.memory_space<vmem>>, %arg11: memref<1x128xf32, #tpu.memory_space<vmem>>, %arg12: memref<128x128xbf16, #tpu.memory_space<vmem>>, %arg13: memref<1x128xf32, #tpu.memory_space<vmem>>, %arg14: memref<128x128xbf16, #tpu.memory_space<vmem>>, %arg15: memref<1x128xf32, #tpu.memory_space<vmem>>, %arg16: memref<128x32xbf16, #tpu.memory_space<vmem>>, %arg17: memref<1x32xf32, #tpu.memory_space<vmem>>, %arg18: memref<128x32xf32, #tpu.memory_space<vmem>>) attributes {dimension_semantics = [#tpu.dimension_semantics<parallel>], iteration_bounds = array<i64: 3>, scalar_prefetch = 0 : i64, scratch_operands = 0 : i64, tpu.core_type = #tpu.core_type<tc>, window_params = [{transform_indices = @transform_0, window_bounds = array<i64: 128, 32>}, {pipeline_mode = #tpu.pipeline_mode<synchronous>, transform_indices = @transform_1, window_bounds = array<i64: 32, 128>}, {pipeline_mode = #tpu.pipeline_mode<synchronous>, transform_indices = @transform_2, window_bounds = array<i64: 1, 128>}, {pipeline_mode = #tpu.pipeline_mode<synchronous>, transform_indices = @transform_3, window_bounds = array<i64: 128, 128>}, {pipeline_mode = #tpu.pipeline_mode<synchronous>, transform_indices = @transform_4, window_bounds = array<i64: 1, 128>}, {pipeline_mode = #tpu.pipeline_mode<synchronous>, transform_indices = @transform_5, window_bounds = array<i64: 128, 128>}, {pipeline_mode = #tpu.pipeline_mode<synchronous>, transform_indices = @transform_6, window_bounds = array<i64: 1, 128>}, {pipeline_mode = #tpu.pipeline_mode<synchronous>, transform_indices = @transform_7, window_bounds = array<i64: 128, 128>}, {pipeline_mode = #tpu.pipeline_mode<synchronous>, transform_indices = @transform_8, window_bounds = array<i64: 1, 128>}, {pipeline_mode = #tpu.pipeline_mode<synchronous>, transform_indices = @transform_9, window_bounds = array<i64: 128, 128>}, {pipeline_mode = #tpu.pipeline_mode<synchronous>, transform_indices = @transform_10, window_bounds = array<i64: 1, 128>}, {pipeline_mode = #tpu.pipeline_mode<synchronous>, transform_indices = @transform_11, window_bounds = array<i64: 128, 128>}, {pipeline_mode = #tpu.pipeline_mode<synchronous>, transform_indices = @transform_12, window_bounds = array<i64: 1, 128>}, {pipeline_mode = #tpu.pipeline_mode<synchronous>, transform_indices = @transform_13, window_bounds = array<i64: 128, 128>}, {pipeline_mode = #tpu.pipeline_mode<synchronous>, transform_indices = @transform_14, window_bounds = array<i64: 1, 128>}, {pipeline_mode = #tpu.pipeline_mode<synchronous>, transform_indices = @transform_15, window_bounds = array<i64: 128, 32>}, {pipeline_mode = #tpu.pipeline_mode<synchronous>, transform_indices = @transform_16, window_bounds = array<i64: 1, 32>}, {transform_indices = @transform_17, window_bounds = array<i64: 128, 32>}]} {
    %c0 = arith.constant 0 : index
    %c0_0 = arith.constant 0 : index
    %0 = vector.load %arg3[%c0, %c0_0] : memref<1x128xf32, #tpu.memory_space<vmem>>, vector<1x128xf32>
    %c0_1 = arith.constant 0 : index
    %c0_2 = arith.constant 0 : index
    %1 = vector.load %arg5[%c0_1, %c0_2] : memref<1x128xf32, #tpu.memory_space<vmem>>, vector<1x128xf32>
    %c0_3 = arith.constant 0 : index
    %c0_4 = arith.constant 0 : index
    %2 = vector.load %arg7[%c0_3, %c0_4] : memref<1x128xf32, #tpu.memory_space<vmem>>, vector<1x128xf32>
    %c0_5 = arith.constant 0 : index
    %c0_6 = arith.constant 0 : index
    %3 = vector.load %arg9[%c0_5, %c0_6] : memref<1x128xf32, #tpu.memory_space<vmem>>, vector<1x128xf32>
    %c0_7 = arith.constant 0 : index
    %c0_8 = arith.constant 0 : index
    %4 = vector.load %arg11[%c0_7, %c0_8] : memref<1x128xf32, #tpu.memory_space<vmem>>, vector<1x128xf32>
    %c0_9 = arith.constant 0 : index
    %c0_10 = arith.constant 0 : index
    %5 = vector.load %arg13[%c0_9, %c0_10] : memref<1x128xf32, #tpu.memory_space<vmem>>, vector<1x128xf32>
    %c0_11 = arith.constant 0 : index
    %c0_12 = arith.constant 0 : index
    %6 = vector.load %arg15[%c0_11, %c0_12] : memref<1x128xf32, #tpu.memory_space<vmem>>, vector<1x128xf32>
    %c0_13 = arith.constant 0 : index
    %c0_14 = arith.constant 0 : index
    %7 = vector.load %arg17[%c0_13, %c0_14] : memref<1x32xf32, #tpu.memory_space<vmem>>, vector<1x32xf32>
    %c0_i32 = arith.constant 0 : i32
    %c128_i32 = arith.constant 128 : i32
    %8 = arith.muli %c0_i32, %c128_i32 : i32
    %9 = tpu.assume_multiple %8, 128 : i32
    %10 = arith.index_cast %9 : i32 to index
    %c0_15 = arith.constant 0 : index
    %11 = vector.load %arg1[%10, %c0_15] : memref<128x32xbf16, #tpu.memory_space<vmem>>, vector<128x32xbf16>
    %c0_16 = arith.constant 0 : index
    %c0_17 = arith.constant 0 : index
    %12 = vector.load %arg2[%c0_16, %c0_17] : memref<32x128xbf16, #tpu.memory_space<vmem>>, vector<32x128xbf16>
    %cst = arith.constant dense<0.000000e+00> : vector<128x128xf32>
    %13 = tpu.matmul %11, %12, %cst {dimension_numbers = #tpu.dot_dimension_numbers<[1], [0], [0], [1], [0, 0, 1, 1], [], []>} : vector<128x32xbf16>, vector<32x128xbf16>, vector<128x128xf32> -> vector<128x128xf32>
    %14 = vector.broadcast %0 : vector<1x128xf32> to vector<128x128xf32>
    %15 = arith.addf %13, %14 : vector<128x128xf32>
    %cst_18 = arith.constant 0.000000e+00 : f32
    %16 = vector.broadcast %cst_18 : f32 to vector<128x128xf32>
    %17 = arith.maximumf %15, %16 : vector<128x128xf32>
    %18 = arith.truncf %17 : vector<128x128xf32> to vector<128x128xbf16>
    %c0_19 = arith.constant 0 : index
    %c0_20 = arith.constant 0 : index
    %19 = vector.load %arg4[%c0_19, %c0_20] : memref<128x128xbf16, #tpu.memory_space<vmem>>, vector<128x128xbf16>
    %cst_21 = arith.constant dense<0.000000e+00> : vector<128x128xf32>
    %20 = tpu.matmul %18, %19, %cst_21 {dimension_numbers = #tpu.dot_dimension_numbers<[1], [0], [0], [1], [0, 0, 1, 1], [], []>} : vector<128x128xbf16>, vector<128x128xbf16>, vector<128x128xf32> -> vector<128x128xf32>
    %21 = vector.broadcast %1 : vector<1x128xf32> to vector<128x128xf32>
    %22 = arith.addf %20, %21 : vector<128x128xf32>
    %cst_22 = arith.constant 0.000000e+00 : f32
    %23 = vector.broadcast %cst_22 : f32 to vector<128x128xf32>
    %24 = arith.maximumf %22, %23 : vector<128x128xf32>
    %25 = arith.truncf %24 : vector<128x128xf32> to vector<128x128xbf16>
    %c0_23 = arith.constant 0 : index
    %c0_24 = arith.constant 0 : index
    %26 = vector.load %arg6[%c0_23, %c0_24] : memref<128x128xbf16, #tpu.memory_space<vmem>>, vector<128x128xbf16>
    %cst_25 = arith.constant dense<0.000000e+00> : vector<128x128xf32>
    %27 = tpu.matmul %25, %26, %cst_25 {dimension_numbers = #tpu.dot_dimension_numbers<[1], [0], [0], [1], [0, 0, 1, 1], [], []>} : vector<128x128xbf16>, vector<128x128xbf16>, vector<128x128xf32> -> vector<128x128xf32>
    %28 = vector.broadcast %2 : vector<1x128xf32> to vector<128x128xf32>
    %29 = arith.addf %27, %28 : vector<128x128xf32>
    %cst_26 = arith.constant 0.000000e+00 : f32
    %30 = vector.broadcast %cst_26 : f32 to vector<128x128xf32>
    %31 = arith.maximumf %29, %30 : vector<128x128xf32>
    %32 = arith.truncf %31 : vector<128x128xf32> to vector<128x128xbf16>
    %c0_27 = arith.constant 0 : index
    %c0_28 = arith.constant 0 : index
    %33 = vector.load %arg8[%c0_27, %c0_28] : memref<128x128xbf16, #tpu.memory_space<vmem>>, vector<128x128xbf16>
    %cst_29 = arith.constant dense<0.000000e+00> : vector<128x128xf32>
    %34 = tpu.matmul %32, %33, %cst_29 {dimension_numbers = #tpu.dot_dimension_numbers<[1], [0], [0], [1], [0, 0, 1, 1], [], []>} : vector<128x128xbf16>, vector<128x128xbf16>, vector<128x128xf32> -> vector<128x128xf32>
    %35 = vector.broadcast %3 : vector<1x128xf32> to vector<128x128xf32>
    %36 = arith.addf %34, %35 : vector<128x128xf32>
    %cst_30 = arith.constant 0.000000e+00 : f32
    %37 = vector.broadcast %cst_30 : f32 to vector<128x128xf32>
    %38 = arith.maximumf %36, %37 : vector<128x128xf32>
    %39 = arith.truncf %38 : vector<128x128xf32> to vector<128x128xbf16>
    %c0_31 = arith.constant 0 : index
    %c0_32 = arith.constant 0 : index
    %40 = vector.load %arg10[%c0_31, %c0_32] : memref<128x128xbf16, #tpu.memory_space<vmem>>, vector<128x128xbf16>
    %cst_33 = arith.constant dense<0.000000e+00> : vector<128x128xf32>
    %41 = tpu.matmul %39, %40, %cst_33 {dimension_numbers = #tpu.dot_dimension_numbers<[1], [0], [0], [1], [0, 0, 1, 1], [], []>} : vector<128x128xbf16>, vector<128x128xbf16>, vector<128x128xf32> -> vector<128x128xf32>
    %42 = vector.broadcast %4 : vector<1x128xf32> to vector<128x128xf32>
    %43 = arith.addf %41, %42 : vector<128x128xf32>
    %cst_34 = arith.constant 0.000000e+00 : f32
    %44 = vector.broadcast %cst_34 : f32 to vector<128x128xf32>
    %45 = arith.maximumf %43, %44 : vector<128x128xf32>
    %46 = arith.truncf %45 : vector<128x128xf32> to vector<128x128xbf16>
    %c0_35 = arith.constant 0 : index
    %c0_36 = arith.constant 0 : index
    %47 = vector.load %arg12[%c0_35, %c0_36] : memref<128x128xbf16, #tpu.memory_space<vmem>>, vector<128x128xbf16>
    %cst_37 = arith.constant dense<0.000000e+00> : vector<128x128xf32>
    %48 = tpu.matmul %46, %47, %cst_37 {dimension_numbers = #tpu.dot_dimension_numbers<[1], [0], [0], [1], [0, 0, 1, 1], [], []>} : vector<128x128xbf16>, vector<128x128xbf16>, vector<128x128xf32> -> vector<128x128xf32>
    %49 = vector.broadcast %5 : vector<1x128xf32> to vector<128x128xf32>
    %50 = arith.addf %48, %49 : vector<128x128xf32>
    %cst_38 = arith.constant 0.000000e+00 : f32
    %51 = vector.broadcast %cst_38 : f32 to vector<128x128xf32>
    %52 = arith.maximumf %50, %51 : vector<128x128xf32>
    %53 = arith.truncf %52 : vector<128x128xf32> to vector<128x128xbf16>
    %c0_39 = arith.constant 0 : index
    %c0_40 = arith.constant 0 : index
    %54 = vector.load %arg14[%c0_39, %c0_40] : memref<128x128xbf16, #tpu.memory_space<vmem>>, vector<128x128xbf16>
    %cst_41 = arith.constant dense<0.000000e+00> : vector<128x128xf32>
    %55 = tpu.matmul %53, %54, %cst_41 {dimension_numbers = #tpu.dot_dimension_numbers<[1], [0], [0], [1], [0, 0, 1, 1], [], []>} : vector<128x128xbf16>, vector<128x128xbf16>, vector<128x128xf32> -> vector<128x128xf32>
    %56 = vector.broadcast %6 : vector<1x128xf32> to vector<128x128xf32>
    %57 = arith.addf %55, %56 : vector<128x128xf32>
    %cst_42 = arith.constant 0.000000e+00 : f32
    %58 = vector.broadcast %cst_42 : f32 to vector<128x128xf32>
    %59 = arith.maximumf %57, %58 : vector<128x128xf32>
    %60 = arith.truncf %59 : vector<128x128xf32> to vector<128x128xbf16>
    %c0_43 = arith.constant 0 : index
    %c0_44 = arith.constant 0 : index
    %61 = vector.load %arg16[%c0_43, %c0_44] : memref<128x32xbf16, #tpu.memory_space<vmem>>, vector<128x32xbf16>
    %cst_45 = arith.constant dense<0.000000e+00> : vector<128x32xf32>
    %62 = tpu.matmul %60, %61, %cst_45 {dimension_numbers = #tpu.dot_dimension_numbers<[1], [0], [0], [1], [0, 0, 1, 1], [], []>} : vector<128x128xbf16>, vector<128x32xbf16>, vector<128x32xf32> -> vector<128x32xf32>
    %63 = vector.broadcast %7 : vector<1x32xf32> to vector<128x32xf32>
    %64 = arith.addf %62, %63 : vector<128x32xf32>
    %cst_46 = arith.constant 0.000000e+00 : f32
    %65 = vector.broadcast %cst_46 : f32 to vector<128x32xf32>
    %66 = arith.maximumf %64, %65 : vector<128x32xf32>
    %67 = arith.index_cast %9 : i32 to index
    %c0_47 = arith.constant 0 : index
    %68 = vector.load %arg18[%67, %c0_47] : memref<128x32xf32, #tpu.memory_space<vmem>>, vector<128x32xf32>
    tpu.vector_store %arg18[%67, %c0_47], %66 {strides = array<i32>} : memref<128x32xf32, #tpu.memory_space<vmem>>, vector<128x32xf32>,
    %c1_i32 = arith.constant 1 : i32
    return
  }
  func.func @transform_0(%arg0: i32) -> (i32, i32) {
    %c0_i32 = arith.constant 0 : i32
    %c0_i32_0 = arith.constant 0 : i32
    return %arg0, %c0_i32 : i32, i32
  }
  func.func @transform_1(%arg0: i32) -> (i32, i32) {
    %c0_i32 = arith.constant 0 : i32
    %c0_i32_0 = arith.constant 0 : i32
    %c0_i32_1 = arith.constant 0 : i32
    return %c0_i32, %c0_i32_0 : i32, i32
  }
  func.func @transform_2(%arg0: i32) -> (i32, i32) {
    %c0_i32 = arith.constant 0 : i32
    %c0_i32_0 = arith.constant 0 : i32
    %c0_i32_1 = arith.constant 0 : i32
    return %c0_i32, %c0_i32_0 : i32, i32
  }
  func.func @transform_3(%arg0: i32) -> (i32, i32) {
    %c0_i32 = arith.constant 0 : i32
    %c0_i32_0 = arith.constant 0 : i32
    %c0_i32_1 = arith.constant 0 : i32
    return %c0_i32, %c0_i32_0 : i32, i32
  }
  func.func @transform_4(%arg0: i32) -> (i32, i32) {
    %c0_i32 = arith.constant 0 : i32
    %c0_i32_0 = arith.constant 0 : i32
    %c0_i32_1 = arith.constant 0 : i32
    return %c0_i32, %c0_i32_0 : i32, i32
  }
  func.func @transform_5(%arg0: i32) -> (i32, i32) {
    %c0_i32 = arith.constant 0 : i32
    %c0_i32_0 = arith.constant 0 : i32
    %c0_i32_1 = arith.constant 0 : i32
    return %c0_i32, %c0_i32_0 : i32, i32
  }
  func.func @transform_6(%arg0: i32) -> (i32, i32) {
    %c0_i32 = arith.constant 0 : i32
    %c0_i32_0 = arith.constant 0 : i32
    %c0_i32_1 = arith.constant 0 : i32
    return %c0_i32, %c0_i32_0 : i32, i32
  }
  func.func @transform_7(%arg0: i32) -> (i32, i32) {
    %c0_i32 = arith.constant 0 : i32
    %c0_i32_0 = arith.constant 0 : i32
    %c0_i32_1 = arith.constant 0 : i32
    return %c0_i32, %c0_i32_0 : i32, i32
  }
  func.func @transform_8(%arg0: i32) -> (i32, i32) {
    %c0_i32 = arith.constant 0 : i32
    %c0_i32_0 = arith.constant 0 : i32
    %c0_i32_1 = arith.constant 0 : i32
    return %c0_i32, %c0_i32_0 : i32, i32
  }
  func.func @transform_9(%arg0: i32) -> (i32, i32) {
    %c0_i32 = arith.constant 0 : i32
    %c0_i32_0 = arith.constant 0 : i32
    %c0_i32_1 = arith.constant 0 : i32
    return %c0_i32, %c0_i32_0 : i32, i32
  }
  func.func @transform_10(%arg0: i32) -> (i32, i32) {
    %c0_i32 = arith.constant 0 : i32
    %c0_i32_0 = arith.constant 0 : i32
    %c0_i32_1 = arith.constant 0 : i32
    return %c0_i32, %c0_i32_0 : i32, i32
  }
  func.func @transform_11(%arg0: i32) -> (i32, i32) {
    %c0_i32 = arith.constant 0 : i32
    %c0_i32_0 = arith.constant 0 : i32
    %c0_i32_1 = arith.constant 0 : i32
    return %c0_i32, %c0_i32_0 : i32, i32
  }
  func.func @transform_12(%arg0: i32) -> (i32, i32) {
    %c0_i32 = arith.constant 0 : i32
    %c0_i32_0 = arith.constant 0 : i32
    %c0_i32_1 = arith.constant 0 : i32
    return %c0_i32, %c0_i32_0 : i32, i32
  }
  func.func @transform_13(%arg0: i32) -> (i32, i32) {
    %c0_i32 = arith.constant 0 : i32
    %c0_i32_0 = arith.constant 0 : i32
    %c0_i32_1 = arith.constant 0 : i32
    return %c0_i32, %c0_i32_0 : i32, i32
  }
  func.func @transform_14(%arg0: i32) -> (i32, i32) {
    %c0_i32 = arith.constant 0 : i32
    %c0_i32_0 = arith.constant 0 : i32
    %c0_i32_1 = arith.constant 0 : i32
    return %c0_i32, %c0_i32_0 : i32, i32
  }
  func.func @transform_15(%arg0: i32) -> (i32, i32) {
    %c0_i32 = arith.constant 0 : i32
    %c0_i32_0 = arith.constant 0 : i32
    %c0_i32_1 = arith.constant 0 : i32
    return %c0_i32, %c0_i32_0 : i32, i32
  }
  func.func @transform_16(%arg0: i32) -> (i32, i32) {
    %c0_i32 = arith.constant 0 : i32
    %c0_i32_0 = arith.constant 0 : i32
    %c0_i32_1 = arith.constant 0 : i32
    return %c0_i32, %c0_i32_0 : i32, i32
  }
  func.func @transform_17(%arg0: i32) -> (i32, i32) {
    %c0_i32 = arith.constant 0 : i32
    %c0_i32_0 = arith.constant 0 : i32
    return %arg0, %c0_i32 : i32, i32
  }
}

</mosaic_0001>

<bundles_post_ra>
// kernel: autoencoder_forward.1
= control target key start
LH: loop header
LB: loop body
LE: loop exit
PB: predicated region body
PF: predicated region fallthrough
CT: control target
= control target key end

     0   :  { %s2833_s24 = smov 0   ;;  %s3140_s0 = inlined_call_operand.vmem [shape: bf16[384,32], index: 0, kind: input, shape index: {}]   ;;  %s3141_s1 = inlined_call_operand.vmem [shape: bf16[32,128], index: 1, kind: input, shape index: {}]   ;;  %s3142_s2 = inlined_call_operand.vmem [shape: f32[1,128], index: 2, kind: input, shape index: {}]   ;;  %s3143_s3 = inlined_call_operand.vmem [shape: bf16[128,128], index: 3, kind: input, shape index: {}]   ;;  %s3144_s4 = inlined_call_operand.vmem [shape: f32[1,128], index: 4, kind: input, shape index: {}]   ;;  %s3145_s5 = inlined_call_operand.vmem [shape: bf16[128,128], index: 5, kind: input, shape index: {}]   ;;  %s3146_s6 = inlined_call_operand.vmem [shape: f32[1,128], index: 6, kind: input, shape index: {}]   ;;  %s3147_s7 = inlined_call_operand.vmem [shape: bf16[128,128], index: 7, kind: input, shape index: {}]   ;;  %s3148_s8 = inlined_call_operand.vmem [shape: f32[1,128], index: 8, kind: input, shape index: {}]   ;;  %s3149_s9 = inlined_call_operand.vmem [shape: bf16[128,128], index: 9, kind: input, shape index: {}]   ;;  %s3150_s10 = inlined_call_operand.vmem [shape: f32[1,128], index: 10, kind: input, shape index: {}]   ;;  %s3151_s11 = inlined_call_operand.vmem [shape: bf16[128,128], index: 11, kind: input, shape index: {}]   ;;  %s3152_s12 = inlined_call_operand.vmem [shape: f32[1,128], index: 12, kind: input, shape index: {}]   ;;  %s3153_s13 = inlined_call_operand.vmem [shape: bf16[128,128], index: 13, kind: input, shape index: {}]   ;;  %s3154_s14 = inlined_call_operand.vmem [shape: f32[1,128], index: 14, kind: input, shape index: {}]   ;;  %s3155_s15 = inlined_call_operand.vmem [shape: bf16[128,32], index: 15, kind: input, shape index: {}]   ;;  %s3156_s16 = inlined_call_operand.vmem [shape: f32[1,32], index: 16, kind: input, shape index: {}]   ;;  %s3157_s17 = inlined_call_operand.vmem [shape: f32[384,32], index: 17, kind: output, shape index: {}]  }
   0x1   :  { %3159 = sst [smem:[#allocation2_spill]] %s3140_s0 }
   0x2   :  { %3160 = sst [smem:[#allocation3_spill]] %s3141_s1 }
   0x3 LB: > { %s2186_s25 = sadd.s32 4294967295, %s2741_s24   ;;  %p2190_p0 = scmp.ge.s32.totalorder %s2741_s24, 1  ;;  %s2741_s24 = sphi %s2833_s24, %s27_s24  }
   0x4   : > { %p488_p1 = scmp.lt.s32.totalorder %s2741_s24, 4 }
   0x6   : > { %p489_p2 = pnand %p2190_p0, %p488_p1 }
   0x7   : > { %s3161_s28 = sld [smem:[#allocation3_spill]] (!%p489_p2)  ;;  %s2191_s29 = sshll.u32 (!%p489_p2), %s2186_s25, 4  ;;  %v2679_v2 = vld [vmem:[%s3143_s3] sm:$0xff] (!%p489_p2)   ;;  %v2680_v3 = vld [vmem:[%s3143_s3 + $0x8] sm:$0xff] (!%p489_p2)   ;;  %vm639_vm0 = vcmask (!%p489_p2), 261120   ;;  %v2681_v4 = vld [vmem:[%s3143_s3 + $0x10] sm:$0xff] (!%p489_p2)  }
   0x8   : > { %492 = sbr.rel (%p489_p2) target bundleno = 1820 (0x71c), region = 88  ;;  %p541_p3 = scmp.lt.s32.totalorder (!%p489_p2), %s2191_s29, 47  ;;  %2421 = vmatprep.subr.bf16.mxu1 (!%p489_p2), %v2679_v2  ;;  %v2682_v8 = vld [vmem:[%s3143_s3 + $0x18] sm:$0xff] (!%p489_p2)   ;;  %v2683_v9 = vld [vmem:[%s3143_s3 + $0x20] sm:$0xff] (!%p489_p2)   ;;  %v2684_v12 = vld [vmem:[%s3143_s3 + $0x28] sm:$0xff] (!%p489_p2)  }
   0x9   : > { %2422 = vmatpush3.bf16.msra.mxu1 (!%p489_p2), %v2679_v2  ;;  %s3162_s25 = sld [smem:[#allocation2_spill]] (!%p489_p2)  ;;  %v2685_v16 = vld [vmem:[%s3143_s3 + $0x30] sm:$0xff] (!%p489_p2)   ;;  %v2686_v17 = vld [vmem:[%s3143_s3 + $0x38] sm:$0xff] (!%p489_p2)   ;;  %v2687_v18 = vld [vmem:[%s3145_s5] sm:$0xff] (!%p489_p2)  }
   0xa   : > { %2423 = vmatprep.subr.bf16.mxu1 (!%p489_p2), %v2680_v3  ;;  %v2688_v19 = vld [vmem:[%s3145_s5 + $0x8] sm:$0xff] (!%p489_p2)   ;;  %v2689_v20 = vld [vmem:[%s3145_s5 + $0x10] sm:$0xff] (!%p489_p2)   ;;  %v2690_v21 = vld [vmem:[%s3145_s5 + $0x18] sm:$0xff] (!%p489_p2)  }
   0xb   : > { %v2691_v22 = vld [vmem:[%s3145_s5 + $0x20] sm:$0xff] (!%p489_p2)   ;;  %v2692_v23 = vld [vmem:[%s3145_s5 + $0x28] sm:$0xff] (!%p489_p2)  }
   0xc   : > { %v2195_v24 = vld [vmem:[%s3142_s2] ss:$0 sm:$0xff] (!%p489_p2) }
   0xd   : > { %v2669_v0 = vld [vmem:[%s3161_s28] sm:$0xff] (!%p489_p2)   ;;  %v2670_v1 = vld [vmem:[%s3161_s28 + $0x8] sm:$0xff] (!%p489_p2)   ;;  %2424 = vmatpush3.bf16.msra.mxu1 (!%p489_p2), %v2680_v3 }
   0xe   : > { %2401 = vmatprep.subr.bf16.mxu0 (!%p489_p2), %v2669_v0  ;;  %2425 = vmatprep.subr.bf16.mxu1 (!%p489_p2), %v2681_v4 }
   0xf   : > { %2402 = vmatpush3.bf16.msra.mxu0 %v2669_v0  ;;  %s3164_s29 = smov (!%p541_p3, %s2191_s29), 47 }
  0x10   : > { %2403 = vmatprep.subr.bf16.mxu0 %v2670_v1  ;;  %s2192_s21 = sshll.u32 %s3164_s29, 2  ;;  %s2194_s19 = sshll.u32 %s3164_s29, 3 }
  0x11   : > { %s2859_s26 = scalar_lea.vmem %s3162_s25, %s2192_s21  ;;  %2426 = vmatpush3.bf16.msra.mxu1 %v2681_v4  ;;  %s3103_s21 = scalar_lea.vmem %s3157_s17, %s2194_s19 }
  0x12   : > { %v2671_v5 = vld [vmem:[%s2859_s26] sm:$0xff]   ;;  %v2672_v6 = vld [vmem:[%s2859_s26 + $0x8] sm:$0xff]   ;;  %v2673_v7 = vld [vmem:[%s2859_s26 + $0x10] sm:$0xff]   ;;  %2427 = vmatprep.subr.bf16.mxu1 %v2682_v8 }
  0x13   : > { %2404 = vmatpush3.bf16.msra.mxu0 %v2670_v1  ;;  %2405 = vmatprep.mubr.msk.bf16.mxu0 %vm639_vm0, %v2671_v5  ;;  %v2674_v10 = vld [vmem:[%s2859_s26 + $0x18] sm:$0xff]   ;;  %v2675_v11 = vld [vmem:[%s2859_s26 + $0x20] sm:$0xff]   ;;  %v2676_v13 = vld [vmem:[%s2859_s26 + $0x28] sm:$0xff]  }
  0x14   : > { %v2677_v14 = vld [vmem:[%s2859_s26 + $0x30] sm:$0xff]   ;;  %v2678_v15 = vld [vmem:[%s2859_s26 + $0x38] sm:$0xff]   ;;  %2453 = vmatprep.subr.bf16.mxu0 %v2687_v18 }
  0x15   : > { %2428 = vmatpush3.bf16.msra.mxu1 %v2682_v8 }
  0x16   : > { %2406 = vmatmul.mubr.msk.bf16.vlgmr.msra.gmra.mrb[0].mxu0 %vm639_vm0, %v2672_v6  ;;  %2429 = vmatprep.subr.bf16.mxu1 %v2683_v9 }
  0x17   : > { %2409 = vmatprep.mubr.msk.bf16.mxu0 %vm639_vm0, %v2673_v7  ;;  %2454 = vmatpush3.bf16.msra.mxu0 %v2687_v18  ;;  %v2694_v18 = vld [vmem:[%s3145_s5 + $0x38] sm:$0xff]  }
  0x18   : > { %2455 = vmatprep.subr.bf16.mxu0 %v2688_v19 }
  0x19   : > { %2430 = vmatpush3.bf16.msra.mxu1 %v2683_v9 }
  0x1a   : > { %2431 = vmatprep.subr.bf16.mxu1 %v2684_v12 }
  0x1b   : > { %2456 = vmatpush3.bf16.msra.mxu0 %v2688_v19  ;;  %v2695_v19 = vld [vmem:[%s3147_s7] sm:$0xff]  }
  0x1c   : > { %2457 = vmatprep.subr.bf16.mxu0 %v2689_v20 }
  0x1d   : > { %2432 = vmatpush3.bf16.msra.mxu1 %v2684_v12 }
  0x1e   : > { %2410 = vmatmul.mubr.msk.bf16.gmra.mrb[4].mxu0 %vm639_vm0, %v2674_v10  ;;  %2433 = vmatprep.subr.bf16.mxu1 %v2685_v16 }
  0x1f   : > { %2413 = vmatprep.mubr.msk.bf16.mxu0 %vm639_vm0, %v2675_v11  ;;  %2458 = vmatpush3.bf16.msra.mxu0 %v2689_v20  ;;  %v2696_v20 = vld [vmem:[%s3147_s7 + $0x8] sm:$0xff]  }
  0x20   : > { %2459 = vmatprep.subr.bf16.mxu0 %v2690_v21 }
  0x21   : > { %2434 = vmatpush3.bf16.msra.mxu1 %v2685_v16 }
  0x22   : > { %2435 = vmatprep.subr.bf16.mxu1 %v2686_v17 }
  0x23   : > { %2460 = vmatpush3.bf16.msra.mxu0 %v2690_v21  ;;  %v2697_v21 = vld [vmem:[%s3147_s7 + $0x10] sm:$0xff]  }
  0x24   : > { %2461 = vmatprep.subr.bf16.mxu0 %v2691_v22 }
  0x25   : > { %2436 = vmatpush3.bf16.msra.mxu1 %v2686_v17  ;;  %v2693_v17 = vld [vmem:[%s3145_s5 + $0x30] sm:$0xff]  }
  0x26   : > { %2414 = vmatmul.mubr.msk.bf16.gmra.mrb[8].mxu0 %vm639_vm0, %v2676_v13  ;;  %2485 = vmatprep.subr.bf16.mxu1 %v2695_v19 }
  0x27   : > { %2417 = vmatprep.mubr.msk.bf16.mxu0 %vm639_vm0, %v2677_v14  ;;  %2462 = vmatpush3.bf16.msra.mxu0 %v2691_v22  ;;  %v2698_v22 = vld [vmem:[%s3147_s7 + $0x18] sm:$0xff]  }
  0x28   : > { %2463 = vmatprep.subr.bf16.mxu0 %v2692_v23 }
  0x2b   : > { %2464 = vmatpush3.bf16.msra.mxu0 %v2692_v23  ;;  %v2699_v23 = vld [vmem:[%s3147_s7 + $0x20] sm:$0xff]  }
  0x2c   : > { %2465 = vmatprep.subr.bf16.mxu0 %v2693_v17 }
  0x2e   : > { %2418 = vmatmul.mubr.msk.bf16.gmra.mrb[12].mxu0 %vm639_vm0, %v2678_v15 }
  0x2f   : > { %2466 = vmatpush3.bf16.msra.mxu0 %v2693_v17 }
  0x30   : > { %2467 = vmatprep.subr.bf16.mxu0 %v2694_v18 }
  0x33   : > { %2468 = vmatpush3.bf16.msra.mxu0 %v2694_v18  ;;  %v2701_v18 = vld [vmem:[%s3147_s7 + $0x30] sm:$0xff]  }
  0xe9   : > { %v2407_v25 = vpop.f32.mrb[0].mxu0 }
  0xea   : > { %v707_v26 = vadd.f32 %v2407_v25, %v2195_v24  ;;  %v698_v27 = vpop.f32.mrb[1].mxu0  ;;  %v2214_v25 = vld [vmem:[%s3144_s4] ss:$0 sm:$0xff] }
  0xeb   : > { %v699_v28 = vadd.f32 %v2195_v24, %v698_v27  ;;  %v2408_v29 = vpop.f32.mrb[2].mxu0 }
  0xec   : > { %v710_v30 = vadd.f32 %v2408_v29, %v2195_v24  ;;  %v701_v31 = vpop.f32.mrb[3].mxu0  ;;  %v763_v33 = vmax.f32 %v707_v26, 0.0 }
  0xed   : > { %v702_v32 = vadd.f32 %v2195_v24, %v701_v31  ;;  %v761_v35 = vmax.f32 %v699_v28, 0.0 }
  0xee   : > { %v764_v34 = vmax.f32 %v710_v30, 0.0 }
  0xef   : > { %v762_v36 = vmax.f32 %v702_v32, 0.0 }
  0xf0   : > { %v778_v37 = vpack.c.bf16 %v764_v34, %v763_v33 }
  0xf1   : > { %v2411_v38 = vpop.f32.mrb[4].mxu0  ;;  %v777_v39 = vpack.c.bf16 %v762_v36, %v761_v35 }
  0xf2   : > { %v723_v40 = vadd.f32 %v2411_v38, %v2195_v24  ;;  %v714_v41 = vpop.f32.mrb[5].mxu0 }
  0xf3   : > { %v715_v42 = vadd.f32 %v2195_v24, %v714_v41  ;;  %v2412_v43 = vpop.f32.mrb[6].mxu0  ;;  %2437 = vmatprep.mubr.bf16.mxu1 %v777_v39 }
  0xf4   : > { %v726_v44 = vadd.f32 %v2412_v43, %v2195_v24  ;;  %v717_v45 = vpop.f32.mrb[7].mxu0  ;;  %2438 = vmatmul.mubr.bf16.vlgmr.msra.gmra.mrb[0].mxu1 %v778_v37  ;;  %v767_v47 = vmax.f32 %v723_v40, 0.0 }
  0xf5   : > { %v718_v46 = vadd.f32 %v2195_v24, %v717_v45  ;;  %v765_v49 = vmax.f32 %v715_v42, 0.0  ;;  %2486 = vmatpush3.bf16.msra.mxu1 %v2695_v19  ;;  %v2702_v19 = vld [vmem:[%s3147_s7 + $0x38] sm:$0xff]  }
  0xf6   : > { %v768_v48 = vmax.f32 %v726_v44, 0.0  ;;  %2487 = vmatprep.subr.bf16.mxu1 %v2696_v20 }
  0xf7   : > { %v766_v50 = vmax.f32 %v718_v46, 0.0 }
  0xf8   : > { %v780_v51 = vpack.c.bf16 %v768_v48, %v767_v47 }
  0xf9   : > { %v779_v52 = vpack.c.bf16 %v766_v50, %v765_v49  ;;  %v2415_v53 = vpop.f32.mrb[8].mxu0  ;;  %2488 = vmatpush3.bf16.msra.mxu1 %v2696_v20  ;;  %v2703_v20 = vld [vmem:[%s3149_s9] sm:$0xff]  }
  0xfa   : > { %v739_v54 = vadd.f32 %v2415_v53, %v2195_v24  ;;  %v730_v55 = vpop.f32.mrb[9].mxu0  ;;  %2489 = vmatprep.subr.bf16.mxu1 %v2697_v21  ;;  %2517 = vmatprep.subr.bf16.mxu0 %v2703_v20 }
  0xfb   : > { %v731_v56 = vadd.f32 %v2195_v24, %v730_v55  ;;  %v2416_v57 = vpop.f32.mrb[10].mxu0  ;;  %2441 = vmatprep.mubr.bf16.mxu1 %v779_v52 }
  0xfc   : > { %v742_v58 = vadd.f32 %v2416_v57, %v2195_v24  ;;  %v733_v59 = vpop.f32.mrb[11].mxu0  ;;  %2442 = vmatmul.mubr.bf16.gmra.mrb[4].mxu1 %v780_v51  ;;  %v771_v61 = vmax.f32 %v739_v54, 0.0 }
  0xfd   : > { %v734_v60 = vadd.f32 %v2195_v24, %v733_v59  ;;  %v769_v63 = vmax.f32 %v731_v56, 0.0  ;;  %2490 = vmatpush3.bf16.msra.mxu1 %v2697_v21  ;;  %v2704_v21 = vld [vmem:[%s3149_s9 + $0x8] sm:$0xff]  }
  0xfe   : > { %v772_v62 = vmax.f32 %v742_v58, 0.0  ;;  %2491 = vmatprep.subr.bf16.mxu1 %v2698_v22 }
  0xff   : > { %v770_v0 = vmax.f32 %v734_v60, 0.0 }
 0x100   : > { %v782_v1 = vpack.c.bf16 %v772_v62, %v771_v61 }
 0x101   : > { %v781_v2 = vpack.c.bf16 %v770_v0, %v769_v63  ;;  %v2419_v3 = vpop.f32.mrb[12].mxu0  ;;  %2492 = vmatpush3.bf16.msra.mxu1 %v2698_v22  ;;  %v2705_v22 = vld [vmem:[%s3149_s9 + $0x10] sm:$0xff]  }
 0x102   : > { %v755_v4 = vadd.f32 %v2419_v3, %v2195_v24  ;;  %v746_v5 = vpop.f32.mrb[13].mxu0  ;;  %2493 = vmatprep.subr.bf16.mxu1 %v2699_v23 }
 0x103   : > { %v747_v6 = vadd.f32 %v2195_v24, %v746_v5  ;;  %v2420_v7 = vpop.f32.mrb[14].mxu0  ;;  %2445 = vmatprep.mubr.bf16.mxu1 %v781_v2 }
 0x104   : > { %v758_v8 = vadd.f32 %v2420_v7, %v2195_v24  ;;  %v749_v9 = vpop.f32.mrb[15].mxu0  ;;  %2446 = vmatmul.mubr.bf16.gmra.mrb[8].mxu1 %v782_v1  ;;  %v775_v11 = vmax.f32 %v755_v4, 0.0 }
 0x105   : > { %v750_v10 = vadd.f32 %v2195_v24, %v749_v9  ;;  %v773_v13 = vmax.f32 %v747_v6, 0.0  ;;  %v2700_v24 = vld [vmem:[%s3147_s7 + $0x28] sm:$0xff]   ;;  %2494 = vmatpush3.bf16.msra.mxu1 %v2699_v23  ;;  %v2706_v23 = vld [vmem:[%s3149_s9 + $0x18] sm:$0xff]  }
 0x106   : > { %v776_v12 = vmax.f32 %v758_v8, 0.0  ;;  %2495 = vmatprep.subr.bf16.mxu1 %v2700_v24 }
 0x107   : > { %v774_v14 = vmax.f32 %v750_v10, 0.0 }
 0x108   : > { %v784_v15 = vpack.c.bf16 %v776_v12, %v775_v11 }
 0x109   : > { %v783_v16 = vpack.c.bf16 %v774_v14, %v773_v13  ;;  %2496 = vmatpush3.bf16.msra.mxu1 %v2700_v24  ;;  %v2707_v24 = vld [vmem:[%s3149_s9 + $0x20] sm:$0xff]  }
 0x10a   : > { %2497 = vmatprep.subr.bf16.mxu1 %v2701_v18 }
 0x10b   : > { %2449 = vmatprep.mubr.bf16.mxu1 %v783_v16 }
 0x10c   : > { %2450 = vmatmul.mubr.bf16.gmra.mrb[12].mxu1 %v784_v15 }
 0x10d   : > { %2498 = vmatpush3.bf16.msra.mxu1 %v2701_v18 }
 0x10e   : > { %2499 = vmatprep.subr.bf16.mxu1 %v2702_v19 }
 0x111   : > { %2500 = vmatpush3.bf16.msra.mxu1 %v2702_v19  ;;  %v2709_v19 = vld [vmem:[%s3149_s9 + $0x30] sm:$0xff]  }
 0x1c7   : > { %v2439_v26 = vpop.f32.mrb[0].mxu1 }
 0x1c8   : > { %v898_v27 = vadd.f32 %v2439_v26, %v2214_v25  ;;  %v889_v28 = vpop.f32.mrb[1].mxu1  ;;  %v2223_v26 = vld [vmem:[%s3146_s6] ss:$0 sm:$0xff] }
 0x1c9   : > { %v890_v29 = vadd.f32 %v2214_v25, %v889_v28  ;;  %v2440_v30 = vpop.f32.mrb[2].mxu1 }
 0x1ca   : > { %v901_v31 = vadd.f32 %v2440_v30, %v2214_v25  ;;  %v892_v32 = vpop.f32.mrb[3].mxu1  ;;  %v954_v34 = vmax.f32 %v898_v27, 0.0 }
 0x1cb   : > { %v893_v33 = vadd.f32 %v2214_v25, %v892_v32  ;;  %v952_v36 = vmax.f32 %v890_v29, 0.0 }
 0x1cc   : > { %v955_v35 = vmax.f32 %v901_v31, 0.0 }
 0x1cd   : > { %v953_v37 = vmax.f32 %v893_v33, 0.0 }
 0x1ce   : > { %v969_v38 = vpack.c.bf16 %v955_v35, %v954_v34 }
 0x1cf   : > { %v968_v39 = vpack.c.bf16 %v953_v37, %v952_v36  ;;  %v2443_v40 = vpop.f32.mrb[4].mxu1 }
 0x1d0   : > { %v914_v41 = vadd.f32 %v2443_v40, %v2214_v25  ;;  %v905_v42 = vpop.f32.mrb[5].mxu1 }
 0x1d1   : > { %v906_v43 = vadd.f32 %v2214_v25, %v905_v42  ;;  %v2444_v44 = vpop.f32.mrb[6].mxu1  ;;  %2469 = vmatprep.mubr.bf16.mxu0 %v968_v39 }
 0x1d2   : > { %v917_v45 = vadd.f32 %v2444_v44, %v2214_v25  ;;  %v908_v46 = vpop.f32.mrb[7].mxu1  ;;  %2470 = vmatmul.mubr.bf16.vlgmr.msra.gmra.mrb[16].mxu0 %v969_v38  ;;  %v958_v48 = vmax.f32 %v914_v41, 0.0 }
 0x1d3   : > { %v909_v47 = vadd.f32 %v2214_v25, %v908_v46  ;;  %v956_v50 = vmax.f32 %v906_v43, 0.0  ;;  %2518 = vmatpush3.bf16.msra.mxu0 %v2703_v20  ;;  %v2710_v20 = vld [vmem:[%s3149_s9 + $0x38] sm:$0xff]  }
 0x1d4   : > { %v959_v49 = vmax.f32 %v917_v45, 0.0  ;;  %2519 = vmatprep.subr.bf16.mxu0 %v2704_v21 }
 0x1d5   : > { %v957_v51 = vmax.f32 %v909_v47, 0.0 }
 0x1d6   : > { %v971_v52 = vpack.c.bf16 %v959_v49, %v958_v48 }
 0x1d7   : > { %v970_v53 = vpack.c.bf16 %v957_v51, %v956_v50  ;;  %v2447_v54 = vpop.f32.mrb[8].mxu1  ;;  %2520 = vmatpush3.bf16.msra.mxu0 %v2704_v21  ;;  %v2711_v21 = vld [vmem:[%s3151_s11] sm:$0xff]  }
 0x1d8   : > { %v930_v55 = vadd.f32 %v2447_v54, %v2214_v25  ;;  %v921_v56 = vpop.f32.mrb[9].mxu1  ;;  %2521 = vmatprep.subr.bf16.mxu0 %v2705_v22  ;;  %2549 = vmatprep.subr.bf16.mxu1 %v2711_v21 }
 0x1d9   : > { %v922_v57 = vadd.f32 %v2214_v25, %v921_v56  ;;  %v2448_v58 = vpop.f32.mrb[10].mxu1  ;;  %2473 = vmatprep.mubr.bf16.mxu0 %v970_v53 }
 0x1da   : > { %v933_v59 = vadd.f32 %v2448_v58, %v2214_v25  ;;  %v924_v60 = vpop.f32.mrb[11].mxu1  ;;  %2474 = vmatmul.mubr.bf16.gmra.mrb[20].mxu0 %v971_v52  ;;  %v962_v62 = vmax.f32 %v930_v55, 0.0 }
 0x1db   : > { %v925_v61 = vadd.f32 %v2214_v25, %v924_v60  ;;  %v960_v0 = vmax.f32 %v922_v57, 0.0  ;;  %2522 = vmatpush3.bf16.msra.mxu0 %v2705_v22  ;;  %v2712_v22 = vld [vmem:[%s3151_s11 + $0x8] sm:$0xff]  }
 0x1dc   : > { %v963_v63 = vmax.f32 %v933_v59, 0.0  ;;  %2523 = vmatprep.subr.bf16.mxu0 %v2706_v23 }
 0x1dd   : > { %v961_v1 = vmax.f32 %v925_v61, 0.0 }
 0x1de   : > { %v973_v2 = vpack.c.bf16 %v963_v63, %v962_v62 }
 0x1df   : > { %v972_v3 = vpack.c.bf16 %v961_v1, %v960_v0  ;;  %v2451_v4 = vpop.f32.mrb[12].mxu1  ;;  %2524 = vmatpush3.bf16.msra.mxu0 %v2706_v23  ;;  %v2713_v23 = vld [vmem:[%s3151_s11 + $0x10] sm:$0xff]  }
 0x1e0   : > { %v946_v5 = vadd.f32 %v2451_v4, %v2214_v25  ;;  %v937_v6 = vpop.f32.mrb[13].mxu1  ;;  %2525 = vmatprep.subr.bf16.mxu0 %v2707_v24 }
 0x1e1   : > { %v938_v7 = vadd.f32 %v2214_v25, %v937_v6  ;;  %v2452_v8 = vpop.f32.mrb[14].mxu1  ;;  %2477 = vmatprep.mubr.bf16.mxu0 %v972_v3 }
 0x1e2   : > { %v949_v9 = vadd.f32 %v2452_v8, %v2214_v25  ;;  %v940_v10 = vpop.f32.mrb[15].mxu1  ;;  %2478 = vmatmul.mubr.bf16.gmra.mrb[24].mxu0 %v973_v2  ;;  %v966_v12 = vmax.f32 %v946_v5, 0.0 }
 0x1e3   : > { %v941_v11 = vadd.f32 %v2214_v25, %v940_v10  ;;  %v964_v14 = vmax.f32 %v938_v7, 0.0  ;;  %v2708_v25 = vld [vmem:[%s3149_s9 + $0x28] sm:$0xff]   ;;  %2526 = vmatpush3.bf16.msra.mxu0 %v2707_v24  ;;  %v2714_v24 = vld [vmem:[%s3151_s11 + $0x18] sm:$0xff]  }
 0x1e4   : > { %v967_v13 = vmax.f32 %v949_v9, 0.0  ;;  %2527 = vmatprep.subr.bf16.mxu0 %v2708_v25 }
 0x1e5   : > { %v965_v15 = vmax.f32 %v941_v11, 0.0 }
 0x1e6   : > { %v975_v16 = vpack.c.bf16 %v967_v13, %v966_v12 }
 0x1e7   : > { %v974_v17 = vpack.c.bf16 %v965_v15, %v964_v14  ;;  %2528 = vmatpush3.bf16.msra.mxu0 %v2708_v25  ;;  %v2715_v25 = vld [vmem:[%s3151_s11 + $0x20] sm:$0xff]  }
 0x1e8   : > { %2529 = vmatprep.subr.bf16.mxu0 %v2709_v19 }
 0x1e9   : > { %2481 = vmatprep.mubr.bf16.mxu0 %v974_v17 }
 0x1ea   : > { %2482 = vmatmul.mubr.bf16.gmra.mrb[28].mxu0 %v975_v16 }
 0x1eb   : > { %2530 = vmatpush3.bf16.msra.mxu0 %v2709_v19 }
 0x1ec   : > { %2531 = vmatprep.subr.bf16.mxu0 %v2710_v20 }
 0x1ef   : > { %2532 = vmatpush3.bf16.msra.mxu0 %v2710_v20  ;;  %v2717_v20 = vld [vmem:[%s3151_s11 + $0x30] sm:$0xff]  }
 0x2a5   : > { %v2471_v27 = vpop.f32.mrb[16].mxu0 }
 0x2a6   : > { %v1089_v28 = vadd.f32 %v2471_v27, %v2223_v26  ;;  %v1080_v29 = vpop.f32.mrb[17].mxu0  ;;  %v2232_v27 = vld [vmem:[%s3148_s8] ss:$0 sm:$0xff] }
 0x2a7   : > { %v1081_v30 = vadd.f32 %v2223_v26, %v1080_v29  ;;  %v2472_v31 = vpop.f32.mrb[18].mxu0 }
 0x2a8   : > { %v1092_v32 = vadd.f32 %v2472_v31, %v2223_v26  ;;  %v1083_v33 = vpop.f32.mrb[19].mxu0  ;;  %v1145_v35 = vmax.f32 %v1089_v28, 0.0 }
 0x2a9   : > { %v1084_v34 = vadd.f32 %v2223_v26, %v1083_v33  ;;  %v1143_v37 = vmax.f32 %v1081_v30, 0.0 }
 0x2aa   : > { %v1146_v36 = vmax.f32 %v1092_v32, 0.0 }
 0x2ab   : > { %v1144_v38 = vmax.f32 %v1084_v34, 0.0 }
 0x2ac   : > { %v1160_v39 = vpack.c.bf16 %v1146_v36, %v1145_v35 }
 0x2ad   : > { %v1159_v40 = vpack.c.bf16 %v1144_v38, %v1143_v37  ;;  %v2475_v41 = vpop.f32.mrb[20].mxu0 }
 0x2ae   : > { %v1105_v42 = vadd.f32 %v2475_v41, %v2223_v26  ;;  %v1096_v43 = vpop.f32.mrb[21].mxu0 }
 0x2af   : > { %v1097_v44 = vadd.f32 %v2223_v26, %v1096_v43  ;;  %v2476_v45 = vpop.f32.mrb[22].mxu0  ;;  %2501 = vmatprep.mubr.bf16.mxu1 %v1159_v40 }
 0x2b0   : > { %v1108_v46 = vadd.f32 %v2476_v45, %v2223_v26  ;;  %v1099_v47 = vpop.f32.mrb[23].mxu0  ;;  %2502 = vmatmul.mubr.bf16.vlgmr.msra.gmra.mrb[16].mxu1 %v1160_v39  ;;  %v1149_v49 = vmax.f32 %v1105_v42, 0.0 }
 0x2b1   : > { %v1100_v48 = vadd.f32 %v2223_v26, %v1099_v47  ;;  %v1147_v51 = vmax.f32 %v1097_v44, 0.0  ;;  %2550 = vmatpush3.bf16.msra.mxu1 %v2711_v21  ;;  %v2718_v21 = vld [vmem:[%s3151_s11 + $0x38] sm:$0xff]  }
 0x2b2   : > { %v1150_v50 = vmax.f32 %v1108_v46, 0.0  ;;  %2551 = vmatprep.subr.bf16.mxu1 %v2712_v22 }
 0x2b3   : > { %v1148_v52 = vmax.f32 %v1100_v48, 0.0 }
 0x2b4   : > { %v1162_v53 = vpack.c.bf16 %v1150_v50, %v1149_v49 }
 0x2b5   : > { %v1161_v54 = vpack.c.bf16 %v1148_v52, %v1147_v51  ;;  %v2479_v55 = vpop.f32.mrb[24].mxu0  ;;  %2552 = vmatpush3.bf16.msra.mxu1 %v2712_v22  ;;  %v2719_v22 = vld [vmem:[%s3153_s13] sm:$0xff]  }
 0x2b6   : > { %v1121_v56 = vadd.f32 %v2479_v55, %v2223_v26  ;;  %v1112_v57 = vpop.f32.mrb[25].mxu0  ;;  %2553 = vmatprep.subr.bf16.mxu1 %v2713_v23  ;;  %2581 = vmatprep.subr.bf16.mxu0 %v2719_v22 }
 0x2b7   : > { %v1113_v58 = vadd.f32 %v2223_v26, %v1112_v57  ;;  %v2480_v59 = vpop.f32.mrb[26].mxu0  ;;  %2505 = vmatprep.mubr.bf16.mxu1 %v1161_v54 }
 0x2b8   : > { %v1124_v60 = vadd.f32 %v2480_v59, %v2223_v26  ;;  %v1115_v61 = vpop.f32.mrb[27].mxu0  ;;  %2506 = vmatmul.mubr.bf16.gmra.mrb[20].mxu1 %v1162_v53  ;;  %v1153_v63 = vmax.f32 %v1121_v56, 0.0 }
 0x2b9   : > { %v1116_v62 = vadd.f32 %v2223_v26, %v1115_v61  ;;  %v1151_v1 = vmax.f32 %v1113_v58, 0.0  ;;  %2554 = vmatpush3.bf16.msra.mxu1 %v2713_v23  ;;  %v2720_v23 = vld [vmem:[%s3153_s13 + $0x8] sm:$0xff]  }
 0x2ba   : > { %v1154_v0 = vmax.f32 %v1124_v60, 0.0  ;;  %2555 = vmatprep.subr.bf16.mxu1 %v2714_v24 }
 0x2bb   : > { %v1152_v2 = vmax.f32 %v1116_v62, 0.0 }
 0x2bc   : > { %v1164_v3 = vpack.c.bf16 %v1154_v0, %v1153_v63 }
 0x2bd   : > { %v1163_v4 = vpack.c.bf16 %v1152_v2, %v1151_v1  ;;  %v2483_v5 = vpop.f32.mrb[28].mxu0  ;;  %2556 = vmatpush3.bf16.msra.mxu1 %v2714_v24  ;;  %v2721_v24 = vld [vmem:[%s3153_s13 + $0x10] sm:$0xff]  }
 0x2be   : > { %v1137_v6 = vadd.f32 %v2483_v5, %v2223_v26  ;;  %v1128_v7 = vpop.f32.mrb[29].mxu0  ;;  %2557 = vmatprep.subr.bf16.mxu1 %v2715_v25 }
 0x2bf   : > { %v1129_v8 = vadd.f32 %v2223_v26, %v1128_v7  ;;  %v2484_v9 = vpop.f32.mrb[30].mxu0  ;;  %2509 = vmatprep.mubr.bf16.mxu1 %v1163_v4 }
 0x2c0   : > { %v1140_v10 = vadd.f32 %v2484_v9, %v2223_v26  ;;  %v1131_v11 = vpop.f32.mrb[31].mxu0  ;;  %2510 = vmatmul.mubr.bf16.gmra.mrb[24].mxu1 %v1164_v3  ;;  %v1157_v13 = vmax.f32 %v1137_v6, 0.0 }
 0x2c1   : > { %v1132_v12 = vadd.f32 %v2223_v26, %v1131_v11  ;;  %v1155_v15 = vmax.f32 %v1129_v8, 0.0  ;;  %v2716_v26 = vld [vmem:[%s3151_s11 + $0x28] sm:$0xff]   ;;  %2558 = vmatpush3.bf16.msra.mxu1 %v2715_v25  ;;  %v2722_v25 = vld [vmem:[%s3153_s13 + $0x18] sm:$0xff]  }
 0x2c2   : > { %v1158_v14 = vmax.f32 %v1140_v10, 0.0  ;;  %2559 = vmatprep.subr.bf16.mxu1 %v2716_v26 }
 0x2c3   : > { %v1156_v16 = vmax.f32 %v1132_v12, 0.0 }
 0x2c4   : > { %v1166_v17 = vpack.c.bf16 %v1158_v14, %v1157_v13 }
 0x2c5   : > { %v1165_v18 = vpack.c.bf16 %v1156_v16, %v1155_v15  ;;  %2560 = vmatpush3.bf16.msra.mxu1 %v2716_v26  ;;  %v2723_v26 = vld [vmem:[%s3153_s13 + $0x20] sm:$0xff]  }
 0x2c6   : > { %2561 = vmatprep.subr.bf16.mxu1 %v2717_v20 }
 0x2c7   : > { %2513 = vmatprep.mubr.bf16.mxu1 %v1165_v18 }
 0x2c8   : > { %2514 = vmatmul.mubr.bf16.gmra.mrb[28].mxu1 %v1166_v17 }
 0x2c9   : > { %2562 = vmatpush3.bf16.msra.mxu1 %v2717_v20 }
 0x2ca   : > { %2563 = vmatprep.subr.bf16.mxu1 %v2718_v21 }
 0x2cd   : > { %2564 = vmatpush3.bf16.msra.mxu1 %v2718_v21  ;;  %v2725_v21 = vld [vmem:[%s3153_s13 + $0x30] sm:$0xff]  }
 0x383   : > { %v2503_v28 = vpop.f32.mrb[16].mxu1 }
 0x384   : > { %v1280_v29 = vadd.f32 %v2503_v28, %v2232_v27  ;;  %v1271_v30 = vpop.f32.mrb[17].mxu1  ;;  %v2241_v28 = vld [vmem:[%s3150_s10] ss:$0 sm:$0xff] }
 0x385   : > { %v1272_v31 = vadd.f32 %v2232_v27, %v1271_v30  ;;  %v2504_v32 = vpop.f32.mrb[18].mxu1 }
 0x386   : > { %v1283_v33 = vadd.f32 %v2504_v32, %v2232_v27  ;;  %v1274_v34 = vpop.f32.mrb[19].mxu1  ;;  %v1336_v36 = vmax.f32 %v1280_v29, 0.0 }
 0x387   : > { %v1275_v35 = vadd.f32 %v2232_v27, %v1274_v34  ;;  %v1334_v38 = vmax.f32 %v1272_v31, 0.0 }
 0x388   : > { %v1337_v37 = vmax.f32 %v1283_v33, 0.0 }
 0x389   : > { %v1335_v39 = vmax.f32 %v1275_v35, 0.0 }
 0x38a   : > { %v1351_v40 = vpack.c.bf16 %v1337_v37, %v1336_v36 }
 0x38b   : > { %v1350_v41 = vpack.c.bf16 %v1335_v39, %v1334_v38  ;;  %v2507_v42 = vpop.f32.mrb[20].mxu1 }
 0x38c   : > { %v1296_v43 = vadd.f32 %v2507_v42, %v2232_v27  ;;  %v1287_v44 = vpop.f32.mrb[21].mxu1 }
 0x38d   : > { %v1288_v45 = vadd.f32 %v2232_v27, %v1287_v44  ;;  %v2508_v46 = vpop.f32.mrb[22].mxu1  ;;  %2533 = vmatprep.mubr.bf16.mxu0 %v1350_v41 }
 0x38e   : > { %v1299_v47 = vadd.f32 %v2508_v46, %v2232_v27  ;;  %v1290_v48 = vpop.f32.mrb[23].mxu1  ;;  %2534 = vmatmul.mubr.bf16.vlgmr.msra.gmra.mrb[32].mxu0 %v1351_v40  ;;  %v1340_v50 = vmax.f32 %v1296_v43, 0.0 }
 0x38f   : > { %v1291_v49 = vadd.f32 %v2232_v27, %v1290_v48  ;;  %v1338_v52 = vmax.f32 %v1288_v45, 0.0  ;;  %2582 = vmatpush3.bf16.msra.mxu0 %v2719_v22  ;;  %v2726_v22 = vld [vmem:[%s3153_s13 + $0x38] sm:$0xff]  }
 0x390   : > { %v1341_v51 = vmax.f32 %v1299_v47, 0.0  ;;  %2583 = vmatprep.subr.bf16.mxu0 %v2720_v23 }
 0x391   : > { %v1339_v53 = vmax.f32 %v1291_v49, 0.0 }
 0x392   : > { %v1353_v54 = vpack.c.bf16 %v1341_v51, %v1340_v50 }
 0x393   : > { %v1352_v55 = vpack.c.bf16 %v1339_v53, %v1338_v52  ;;  %v2511_v56 = vpop.f32.mrb[24].mxu1  ;;  %2584 = vmatpush3.bf16.msra.mxu0 %v2720_v23  ;;  %v2727_v23 = vld [vmem:[%s3155_s15] sm:$0xff]  }
 0x394   : > { %v1312_v57 = vadd.f32 %v2511_v56, %v2232_v27  ;;  %v1303_v58 = vpop.f32.mrb[25].mxu1  ;;  %2585 = vmatprep.subr.bf16.mxu0 %v2721_v24  ;;  %2645 = vmatprep.subr.bf16.mxu1 %v2727_v23 }
 0x395   : > { %v1304_v59 = vadd.f32 %v2232_v27, %v1303_v58  ;;  %v2512_v60 = vpop.f32.mrb[26].mxu1  ;;  %2537 = vmatprep.mubr.bf16.mxu0 %v1352_v55 }
 0x396   : > { %v1315_v61 = vadd.f32 %v2512_v60, %v2232_v27  ;;  %v1306_v62 = vpop.f32.mrb[27].mxu1  ;;  %2538 = vmatmul.mubr.bf16.gmra.mrb[36].mxu0 %v1353_v54  ;;  %v1344_v0 = vmax.f32 %v1312_v57, 0.0 }
 0x397   : > { %v1307_v63 = vadd.f32 %v2232_v27, %v1306_v62  ;;  %v1342_v2 = vmax.f32 %v1304_v59, 0.0  ;;  %2586 = vmatpush3.bf16.msra.mxu0 %v2721_v24  ;;  %v2728_v24 = vld [vmem:[%s3155_s15 + $0x8] sm:$0xff]  }
 0x398   : > { %v1345_v1 = vmax.f32 %v1315_v61, 0.0  ;;  %2587 = vmatprep.subr.bf16.mxu0 %v2722_v25 }
 0x399   : > { %v1343_v3 = vmax.f32 %v1307_v63, 0.0 }
 0x39a   : > { %v1355_v4 = vpack.c.bf16 %v1345_v1, %v1344_v0 }
 0x39b   : > { %v1354_v5 = vpack.c.bf16 %v1343_v3, %v1342_v2  ;;  %v2515_v6 = vpop.f32.mrb[28].mxu1  ;;  %2588 = vmatpush3.bf16.msra.mxu0 %v2722_v25  ;;  %v2729_v25 = vld [vmem:[%s3155_s15 + $0x10] sm:$0xff]  }
 0x39c   : > { %v1328_v7 = vadd.f32 %v2515_v6, %v2232_v27  ;;  %v1319_v8 = vpop.f32.mrb[29].mxu1  ;;  %2589 = vmatprep.subr.bf16.mxu0 %v2723_v26 }
 0x39d   : > { %v1320_v9 = vadd.f32 %v2232_v27, %v1319_v8  ;;  %v2516_v10 = vpop.f32.mrb[30].mxu1  ;;  %2541 = vmatprep.mubr.bf16.mxu0 %v1354_v5 }
 0x39e   : > { %v1331_v11 = vadd.f32 %v2516_v10, %v2232_v27  ;;  %v1322_v12 = vpop.f32.mrb[31].mxu1  ;;  %2542 = vmatmul.mubr.bf16.gmra.mrb[40].mxu0 %v1355_v4  ;;  %v1348_v14 = vmax.f32 %v1328_v7, 0.0 }
 0x39f   : > { %v1323_v13 = vadd.f32 %v2232_v27, %v1322_v12  ;;  %v1346_v16 = vmax.f32 %v1320_v9, 0.0  ;;  %v2724_v27 = vld [vmem:[%s3153_s13 + $0x28] sm:$0xff]   ;;  %2590 = vmatpush3.bf16.msra.mxu0 %v2723_v26  ;;  %v3042_v26 = vld [vmem:[%s3155_s15 + $0x18] sm:$0xff]  }
 0x3a0   : > { %v1349_v15 = vmax.f32 %v1331_v11, 0.0  ;;  %2591 = vmatprep.subr.bf16.mxu0 %v2724_v27 }
 0x3a1   : > { %v1347_v17 = vmax.f32 %v1323_v13, 0.0 }
 0x3a2   : > { %v1357_v18 = vpack.c.bf16 %v1349_v15, %v1348_v14 }
 0x3a3   : > { %v1356_v19 = vpack.c.bf16 %v1347_v17, %v1346_v16  ;;  %2592 = vmatpush3.bf16.msra.mxu0 %v2724_v27  ;;  %v3048_v27 = vld [vmem:[%s3155_s15 + $0x20] sm:$0xff]  }
 0x3a4   : > { %2593 = vmatprep.subr.bf16.mxu0 %v2725_v21 }
 0x3a5   : > { %2545 = vmatprep.mubr.bf16.mxu0 %v1356_v19 }
 0x3a6   : > { %2546 = vmatmul.mubr.bf16.gmra.mrb[44].mxu0 %v1357_v18 }
 0x3a7   : > { %2594 = vmatpush3.bf16.msra.mxu0 %v2725_v21 }
 0x3a8   : > { %2595 = vmatprep.subr.bf16.mxu0 %v2726_v22 }
 0x3ab   : > { %2596 = vmatpush3.bf16.msra.mxu0 %v2726_v22  ;;  %v2733_v22 = vld [vmem:[%s3155_s15 + $0x30] sm:$0xff]  }
 0x3ac   : > { %2613 = vmatprep.subr.bf16.mxu0 %v2727_v23 }
 0x461   : > { %v2535_v29 = vpop.f32.mrb[32].mxu0 }
 0x462   : > { %v1471_v30 = vadd.f32 %v2535_v29, %v2241_v28  ;;  %v1462_v31 = vpop.f32.mrb[33].mxu0  ;;  %v3063_v29 = vld [vmem:[%s3152_s12] ss:$0 sm:$0xff] }
 0x463   : > { %v1463_v32 = vadd.f32 %v2241_v28, %v1462_v31  ;;  %v2536_v33 = vpop.f32.mrb[34].mxu0 }
 0x464   : > { %v1474_v34 = vadd.f32 %v2536_v33, %v2241_v28  ;;  %v1465_v35 = vpop.f32.mrb[35].mxu0  ;;  %v1527_v37 = vmax.f32 %v1471_v30, 0.0 }
 0x465   : > { %v1466_v36 = vadd.f32 %v2241_v28, %v1465_v35  ;;  %v1525_v39 = vmax.f32 %v1463_v32, 0.0 }
 0x466   : > { %v1528_v38 = vmax.f32 %v1474_v34, 0.0 }
 0x467   : > { %v1526_v40 = vmax.f32 %v1466_v36, 0.0 }
 0x468   : > { %v1542_v41 = vpack.c.bf16 %v1528_v38, %v1527_v37 }
 0x469   : > { %v1541_v42 = vpack.c.bf16 %v1526_v40, %v1525_v39  ;;  %v2539_v43 = vpop.f32.mrb[36].mxu0 }
 0x46a   : > { %v1487_v44 = vadd.f32 %v2539_v43, %v2241_v28  ;;  %v1478_v45 = vpop.f32.mrb[37].mxu0 }
 0x46b   : > { %v1479_v46 = vadd.f32 %v2241_v28, %v1478_v45  ;;  %v2540_v47 = vpop.f32.mrb[38].mxu0  ;;  %2565 = vmatprep.mubr.bf16.mxu1 %v1541_v42 }
 0x46c   : > { %v1490_v48 = vadd.f32 %v2540_v47, %v2241_v28  ;;  %v1481_v49 = vpop.f32.mrb[39].mxu0  ;;  %2566 = vmatmul.mubr.bf16.vlgmr.msra.gmra.mrb[32].mxu1 %v1542_v41  ;;  %v1531_v51 = vmax.f32 %v1487_v44, 0.0 }
 0x46d   : > { %v1482_v50 = vadd.f32 %v2241_v28, %v1481_v49  ;;  %v1529_v53 = vmax.f32 %v1479_v46, 0.0  ;;  %2653 = vmatpush3.bf16.msra.mxu1 %v2727_v23 }
 0x46e   : > { %v1532_v52 = vmax.f32 %v1490_v48, 0.0  ;;  %2646 = vmatprep.subr.bf16.mxu1 %v2728_v24 }
 0x46f   : > { %v1530_v54 = vmax.f32 %v1482_v50, 0.0 }
 0x470   : > { %v1544_v55 = vpack.c.bf16 %v1532_v52, %v1531_v51 }
 0x471   : > { %v1543_v56 = vpack.c.bf16 %v1530_v54, %v1529_v53  ;;  %v2543_v57 = vpop.f32.mrb[40].mxu0  ;;  %2654 = vmatpush3.bf16.msra.mxu1 %v2728_v24 }
 0x472   : > { %v1503_v58 = vadd.f32 %v2543_v57, %v2241_v28  ;;  %v1494_v59 = vpop.f32.mrb[41].mxu0  ;;  %2647 = vmatprep.subr.bf16.mxu1 %v2729_v25 }
 0x473   : > { %v1495_v60 = vadd.f32 %v2241_v28, %v1494_v59  ;;  %v2544_v61 = vpop.f32.mrb[42].mxu0  ;;  %2569 = vmatprep.mubr.bf16.mxu1 %v1543_v56 }
 0x474   : > { %v1506_v62 = vadd.f32 %v2544_v61, %v2241_v28  ;;  %v1497_v63 = vpop.f32.mrb[43].mxu0  ;;  %2570 = vmatmul.mubr.bf16.gmra.mrb[36].mxu1 %v1544_v55  ;;  %v1535_v1 = vmax.f32 %v1503_v58, 0.0 }
 0x475   : > { %v1498_v0 = vadd.f32 %v2241_v28, %v1497_v63  ;;  %v1533_v3 = vmax.f32 %v1495_v60, 0.0  ;;  %2655 = vmatpush3.bf16.msra.mxu1 %v2729_v25 }
 0x476   : > { %v1536_v2 = vmax.f32 %v1506_v62, 0.0  ;;  %2648 = vmatprep.subr.bf16.mxu1 %v3042_v26 }
 0x477   : > { %v1534_v4 = vmax.f32 %v1498_v0, 0.0 }
 0x478   : > { %v1546_v5 = vpack.c.bf16 %v1536_v2, %v1535_v1 }
 0x479   : > { %v1545_v6 = vpack.c.bf16 %v1534_v4, %v1533_v3  ;;  %v2547_v7 = vpop.f32.mrb[44].mxu0  ;;  %2656 = vmatpush3.bf16.msra.mxu1 %v3042_v26 }
 0x47a   : > { %v1519_v8 = vadd.f32 %v2547_v7, %v2241_v28  ;;  %v1510_v9 = vpop.f32.mrb[45].mxu0  ;;  %2649 = vmatprep.subr.bf16.mxu1 %v3048_v27 }
 0x47b   : > { %v1511_v10 = vadd.f32 %v2241_v28, %v1510_v9  ;;  %v2548_v11 = vpop.f32.mrb[46].mxu0  ;;  %2573 = vmatprep.mubr.bf16.mxu1 %v1545_v6 }
 0x47c   : > { %v1522_v12 = vadd.f32 %v2548_v11, %v2241_v28  ;;  %v1513_v13 = vpop.f32.mrb[47].mxu0  ;;  %2574 = vmatmul.mubr.bf16.gmra.mrb[40].mxu1 %v1546_v5  ;;  %v1539_v15 = vmax.f32 %v1519_v8, 0.0 }
 0x47d   : > { %v1514_v14 = vadd.f32 %v2241_v28, %v1513_v13  ;;  %v1537_v17 = vmax.f32 %v1511_v10, 0.0  ;;  %v3055_v28 = vld [vmem:[%s3155_s15 + $0x28] sm:$0xff]   ;;  %2657 = vmatpush3.bf16.msra.mxu1 %v3048_v27 }
 0x47e   : > { %v1540_v16 = vmax.f32 %v1522_v12, 0.0  ;;  %2650 = vmatprep.subr.bf16.mxu1 %v3055_v28 }
 0x47f   : > { %v1538_v18 = vmax.f32 %v1514_v14, 0.0 }
 0x480   : > { %v1548_v19 = vpack.c.bf16 %v1540_v16, %v1539_v15 }
 0x481   : > { %v1547_v20 = vpack.c.bf16 %v1538_v18, %v1537_v17  ;;  %2658 = vmatpush3.bf16.msra.mxu1 %v3055_v28 }
 0x482   : > { %2651 = vmatprep.subr.bf16.mxu1 %v2733_v22 }
 0x483   : > { %2577 = vmatprep.mubr.bf16.mxu1 %v1547_v20 }
 0x484   : > { %2578 = vmatmul.mubr.bf16.gmra.mrb[44].mxu1 %v1548_v19 }
 0x485   : > { %2659 = vmatpush3.bf16.msra.mxu1 %v2733_v22 }
 0x53f   : > { %v2567_v30 = vpop.f32.mrb[32].mxu1 }
 0x540   : > { %v1662_v31 = vadd.f32 %v2567_v30, %v3063_v29  ;;  %v1653_v32 = vpop.f32.mrb[33].mxu1 }
 0x541   : > { %v1654_v33 = vadd.f32 %v3063_v29, %v1653_v32  ;;  %v2568_v34 = vpop.f32.mrb[34].mxu1 }
 0x542   : > { %v1665_v35 = vadd.f32 %v2568_v34, %v3063_v29  ;;  %v1656_v36 = vpop.f32.mrb[35].mxu1  ;;  %v1718_v38 = vmax.f32 %v1662_v31, 0.0 }
 0x543   : > { %v1657_v37 = vadd.f32 %v3063_v29, %v1656_v36  ;;  %v1716_v40 = vmax.f32 %v1654_v33, 0.0 }
 0x544   : > { %v1719_v39 = vmax.f32 %v1665_v35, 0.0 }
 0x545   : > { %v1717_v41 = vmax.f32 %v1657_v37, 0.0 }
 0x546   : > { %v1733_v42 = vpack.c.bf16 %v1719_v39, %v1718_v38 }
 0x547   : > { %v1732_v43 = vpack.c.bf16 %v1717_v41, %v1716_v40  ;;  %v2571_v44 = vpop.f32.mrb[36].mxu1 }
 0x548   : > { %v1678_v45 = vadd.f32 %v2571_v44, %v3063_v29  ;;  %v1669_v46 = vpop.f32.mrb[37].mxu1 }
 0x549   : > { %v1670_v47 = vadd.f32 %v3063_v29, %v1669_v46  ;;  %v2572_v48 = vpop.f32.mrb[38].mxu1  ;;  %2597 = vmatprep.mubr.bf16.mxu0 %v1732_v43 }
 0x54a   : > { %v1681_v49 = vadd.f32 %v2572_v48, %v3063_v29  ;;  %v1672_v50 = vpop.f32.mrb[39].mxu1  ;;  %2598 = vmatmul.mubr.bf16.vlgmr.msra.gmra.mrb[48].mxu0 %v1733_v42  ;;  %v1722_v52 = vmax.f32 %v1678_v45, 0.0 }
 0x54b   : > { %v1673_v51 = vadd.f32 %v3063_v29, %v1672_v50  ;;  %2614 = vmatpush3.bf16.msra.mxu0 %v2727_v23  ;;  %v1720_v54 = vmax.f32 %v1670_v47, 0.0  ;;  %v2734_v23 = vld [vmem:[%s3155_s15 + $0x38] sm:$0xff]  }
 0x54c   : > { %v1723_v53 = vmax.f32 %v1681_v49, 0.0  ;;  %2615 = vmatprep.subr.bf16.mxu0 %v2728_v24  ;;  %2652 = vmatprep.subr.bf16.mxu1 %v2734_v23 }
 0x54d   : > { %v1721_v55 = vmax.f32 %v1673_v51, 0.0  ;;  %2660 = vmatpush3.bf16.msra.mxu1 %v2734_v23 }
 0x54e   : > { %v1735_v56 = vpack.c.bf16 %v1723_v53, %v1722_v52 }
 0x54f   : > { %v1734_v57 = vpack.c.bf16 %v1721_v55, %v1720_v54  ;;  %v2575_v58 = vpop.f32.mrb[40].mxu1  ;;  %2616 = vmatpush3.bf16.msra.mxu0 %v2728_v24  ;;  %v2259_v24 = vld [vmem:[%s3154_s14] ss:$0 sm:$0xff] }
 0x550   : > { %v1694_v59 = vadd.f32 %v2575_v58, %v3063_v29  ;;  %v1685_v60 = vpop.f32.mrb[41].mxu1  ;;  %2617 = vmatprep.subr.bf16.mxu0 %v2729_v25 }
 0x551   : > { %v1686_v61 = vadd.f32 %v3063_v29, %v1685_v60  ;;  %v2576_v62 = vpop.f32.mrb[42].mxu1  ;;  %2601 = vmatprep.mubr.bf16.mxu0 %v1734_v57 }
 0x552   : > { %v1697_v63 = vadd.f32 %v2576_v62, %v3063_v29  ;;  %v1688_v0 = vpop.f32.mrb[43].mxu1  ;;  %2602 = vmatmul.mubr.bf16.gmra.mrb[52].mxu0 %v1735_v56  ;;  %v1726_v2 = vmax.f32 %v1694_v59, 0.0 }
 0x553   : > { %v1689_v1 = vadd.f32 %v3063_v29, %v1688_v0  ;;  %2618 = vmatpush3.bf16.msra.mxu0 %v2729_v25  ;;  %v1724_v4 = vmax.f32 %v1686_v61, 0.0 }
 0x554   : > { %v1727_v3 = vmax.f32 %v1697_v63, 0.0  ;;  %2619 = vmatprep.subr.bf16.mxu0 %v3042_v26 }
 0x555   : > { %v1725_v5 = vmax.f32 %v1689_v1, 0.0 }
 0x556   : > { %v1737_v6 = vpack.c.bf16 %v1727_v3, %v1726_v2 }
 0x557   : > { %v1736_v7 = vpack.c.bf16 %v1725_v5, %v1724_v4  ;;  %v2579_v8 = vpop.f32.mrb[44].mxu1  ;;  %2620 = vmatpush3.bf16.msra.mxu0 %v3042_v26 }
 0x558   : > { %v1710_v9 = vadd.f32 %v2579_v8, %v3063_v29  ;;  %v1701_v10 = vpop.f32.mrb[45].mxu1  ;;  %2621 = vmatprep.subr.bf16.mxu0 %v3048_v27 }
 0x559   : > { %v1702_v11 = vadd.f32 %v3063_v29, %v1701_v10  ;;  %v2580_v12 = vpop.f32.mrb[46].mxu1  ;;  %2605 = vmatprep.mubr.bf16.mxu0 %v1736_v7 }
 0x55a   : > { %v1713_v13 = vadd.f32 %v2580_v12, %v3063_v29  ;;  %v1704_v14 = vpop.f32.mrb[47].mxu1  ;;  %2606 = vmatmul.mubr.bf16.gmra.mrb[56].mxu0 %v1737_v6  ;;  %v1730_v16 = vmax.f32 %v1710_v9, 0.0 }
 0x55b   : > { %v1705_v15 = vadd.f32 %v3063_v29, %v1704_v14  ;;  %2622 = vmatpush3.bf16.msra.mxu0 %v3048_v27  ;;  %v1728_v18 = vmax.f32 %v1702_v11, 0.0 }
 0x55c   : > { %v1731_v17 = vmax.f32 %v1713_v13, 0.0  ;;  %2623 = vmatprep.subr.bf16.mxu0 %v3055_v28 }
 0x55d   : > { %v1729_v19 = vmax.f32 %v1705_v15, 0.0 }
 0x55e   : > { %v1739_v20 = vpack.c.bf16 %v1731_v17, %v1730_v16  ;;  %v2268_v17 = vld [vmem:[%s3156_s16] ss:$0 sm:$0xff] }
 0x55f   : > { %v1738_v21 = vpack.c.bf16 %v1729_v19, %v1728_v18  ;;  %2624 = vmatpush3.bf16.msra.mxu0 %v3055_v28 }
 0x560   : > { %2625 = vmatprep.subr.bf16.mxu0 %v2733_v22 }
 0x561   : > { %2609 = vmatprep.mubr.bf16.mxu0 %v1738_v21 }
 0x562   : > { %2610 = vmatmul.mubr.bf16.gmra.mrb[60].mxu0 %v1739_v20 }
 0x563   : > { %2626 = vmatpush3.bf16.msra.mxu0 %v2733_v22 }
 0x564   : > { %2627 = vmatprep.subr.bf16.mxu0 %v2734_v23 }
 0x567   : > { %2628 = vmatpush3.bf16.msra.mxu0 %v2734_v23 }
 0x61d   : > { %v2599_v25 = vpop.f32.mrb[48].mxu0 }
 0x61e   : > { %v1853_v26 = vadd.f32 %v2599_v25, %v2259_v24  ;;  %v1844_v27 = vpop.f32.mrb[49].mxu0 }
 0x61f   : > { %v1845_v28 = vadd.f32 %v2259_v24, %v1844_v27  ;;  %v2600_v29 = vpop.f32.mrb[50].mxu0 }
 0x620   : > { %v1856_v30 = vadd.f32 %v2600_v29, %v2259_v24  ;;  %v1847_v31 = vpop.f32.mrb[51].mxu0  ;;  %v1909_v33 = vmax.f32 %v1853_v26, 0.0 }
 0x621   : > { %v1848_v32 = vadd.f32 %v2259_v24, %v1847_v31  ;;  %v1907_v35 = vmax.f32 %v1845_v28, 0.0 }
 0x622   : > { %v1910_v34 = vmax.f32 %v1856_v30, 0.0 }
 0x623   : > { %v1908_v36 = vmax.f32 %v1848_v32, 0.0 }
 0x624   : > { %v1924_v37 = vpack.c.bf16 %v1910_v34, %v1909_v33 }
 0x625   : > { %v1923_v38 = vpack.c.bf16 %v1908_v36, %v1907_v35  ;;  %v2603_v39 = vpop.f32.mrb[52].mxu0 }
 0x626   : > { %v1869_v40 = vadd.f32 %v2603_v39, %v2259_v24  ;;  %v1860_v41 = vpop.f32.mrb[53].mxu0 }
 0x627   : > { %v1861_v42 = vadd.f32 %v2259_v24, %v1860_v41  ;;  %v2604_v43 = vpop.f32.mrb[54].mxu0  ;;  %2629 = vmatprep.mubr.bf16.mxu0 %v1923_v38 }
 0x628   : > { %v1872_v44 = vadd.f32 %v2604_v43, %v2259_v24  ;;  %v1863_v45 = vpop.f32.mrb[55].mxu0  ;;  %2630 = vmatmul.mubr.bf16.vlgmr.msra.gmra.mrb[64].mxu0 %v1924_v37  ;;  %v1913_v47 = vmax.f32 %v1869_v40, 0.0 }
 0x629   : > { %v1864_v46 = vadd.f32 %v2259_v24, %v1863_v45  ;;  %v1911_v49 = vmax.f32 %v1861_v42, 0.0 }
 0x62a   : > { %v1914_v48 = vmax.f32 %v1872_v44, 0.0 }
 0x62b   : > { %v1912_v50 = vmax.f32 %v1864_v46, 0.0 }
 0x62c   : > { %v1926_v51 = vpack.c.bf16 %v1914_v48, %v1913_v47 }
 0x62d   : > { %v1925_v52 = vpack.c.bf16 %v1912_v50, %v1911_v49  ;;  %v2607_v53 = vpop.f32.mrb[56].mxu0 }
 0x62e   : > { %v1885_v54 = vadd.f32 %v2607_v53, %v2259_v24  ;;  %v1876_v55 = vpop.f32.mrb[57].mxu0 }
 0x62f   : > { %v1877_v56 = vadd.f32 %v2259_v24, %v1876_v55  ;;  %v2608_v57 = vpop.f32.mrb[58].mxu0  ;;  %2633 = vmatprep.mubr.bf16.mxu1 %v1925_v52 }
 0x630   : > { %v1888_v58 = vadd.f32 %v2608_v57, %v2259_v24  ;;  %v1879_v59 = vpop.f32.mrb[59].mxu0  ;;  %2634 = vmatmul.mubr.bf16.vlgmr.msra.gmra.mrb[48].mxu1 %v1926_v51  ;;  %v1917_v61 = vmax.f32 %v1885_v54, 0.0 }
 0x631   : > { %v1880_v60 = vadd.f32 %v2259_v24, %v1879_v59  ;;  %v1915_v63 = vmax.f32 %v1877_v56, 0.0 }
 0x632   : > { %v1918_v62 = vmax.f32 %v1888_v58, 0.0 }
 0x633   : > { %v1916_v0 = vmax.f32 %v1880_v60, 0.0 }
 0x634   : > { %v1928_v1 = vpack.c.bf16 %v1918_v62, %v1917_v61 }
 0x635   : > { %v1927_v2 = vpack.c.bf16 %v1916_v0, %v1915_v63  ;;  %v2611_v3 = vpop.f32.mrb[60].mxu0 }
 0x636   : > { %v1901_v4 = vadd.f32 %v2611_v3, %v2259_v24  ;;  %v1892_v5 = vpop.f32.mrb[61].mxu0 }
 0x637   : > { %v1893_v6 = vadd.f32 %v2259_v24, %v1892_v5  ;;  %v2612_v7 = vpop.f32.mrb[62].mxu0  ;;  %2637 = vmatprep.mubr.bf16.mxu1 %v1927_v2 }
 0x638   : > { %v1904_v8 = vadd.f32 %v2612_v7, %v2259_v24  ;;  %v1895_v9 = vpop.f32.mrb[63].mxu0  ;;  %2638 = vmatmul.mubr.bf16.gmra.mrb[52].mxu1 %v1928_v1  ;;  %v1921_v11 = vmax.f32 %v1901_v4, 0.0 }
 0x639   : > { %v1896_v10 = vadd.f32 %v2259_v24, %v1895_v9  ;;  %v1919_v13 = vmax.f32 %v1893_v6, 0.0 }
 0x63a   : > { %v1922_v12 = vmax.f32 %v1904_v8, 0.0 }
 0x63b   : > { %v1920_v14 = vmax.f32 %v1896_v10, 0.0 }
 0x63c   : > { %v1930_v15 = vpack.c.bf16 %v1922_v12, %v1921_v11 }
 0x63d   : > { %v1929_v16 = vpack.c.bf16 %v1920_v14, %v1919_v13 }
 0x63f   : > { %2641 = vmatprep.mubr.bf16.mxu1 %v1929_v16 }
 0x640   : > { %2642 = vmatmul.mubr.bf16.gmra.mrb[56].mxu1 %v1930_v15 }
 0x6fb   : > { %v2631_v18 = vpop.f32.mrb[64].mxu0 }
 0x6fc   : > { %v2044_v19 = vadd.f32 %v2631_v18, %v2268_v17  ;;  %v2035_v20 = vpop.f32.mrb[65].mxu0 }
 0x6fd   : > { %v2036_v21 = vadd.f32 %v2268_v17, %v2035_v20  ;;  %v2632_v22 = vpop.f32.mrb[66].mxu0 }
 0x6fe   : > { %v2100_v23 = vmax.f32 %v2044_v19, 0.0  ;;  %v2047_v24 = vadd.f32 %v2632_v22, %v2268_v17  ;;  %v2038_v25 = vpop.f32.mrb[67].mxu0 }
 0x6ff   : > { %v2098_v26 = vmax.f32 %v2036_v21, 0.0  ;;  %v2039_v27 = vadd.f32 %v2268_v17, %v2038_v25 }
 0x700   : > { %2116 = vst.msk [vmem:[%s3103_s21 + $0x10] sm:$0xff] %vm639_vm0, %v2100_v23  ;;  %v2101_v28 = vmax.f32 %v2047_v24, 0.0 }
 0x701   : > { %2114 = vst.msk [vmem:[%s3103_s21] sm:$0xff] %vm639_vm0, %v2098_v26  ;;  %v2099_v29 = vmax.f32 %v2039_v27, 0.0 }
 0x702   : > { %2117 = vst.msk [vmem:[%s3103_s21 + $0x18] sm:$0xff] %vm639_vm0, %v2101_v28 }
 0x703   : > { %2115 = vst.msk [vmem:[%s3103_s21 + $0x8] sm:$0xff] %vm639_vm0, %v2099_v29  ;;  %v2635_v30 = vpop.f32.mrb[48].mxu1 }
 0x704   : > { %v2060_v31 = vadd.f32 %v2635_v30, %v2268_v17  ;;  %v2051_v32 = vpop.f32.mrb[49].mxu1 }
 0x705   : > { %v2052_v33 = vadd.f32 %v2268_v17, %v2051_v32  ;;  %v2636_v34 = vpop.f32.mrb[50].mxu1 }
 0x706   : > { %v2104_v35 = vmax.f32 %v2060_v31, 0.0  ;;  %v2063_v36 = vadd.f32 %v2636_v34, %v2268_v17  ;;  %v2054_v37 = vpop.f32.mrb[51].mxu1 }
 0x707   : > { %v2102_v38 = vmax.f32 %v2052_v33, 0.0  ;;  %v2055_v39 = vadd.f32 %v2268_v17, %v2054_v37 }
 0x708   : > { %2120 = vst.msk [vmem:[%s3103_s21 + $0x30] sm:$0xff] %vm639_vm0, %v2104_v35  ;;  %v2105_v40 = vmax.f32 %v2063_v36, 0.0 }
 0x709   : > { %2118 = vst.msk [vmem:[%s3103_s21 + $0x20] sm:$0xff] %vm639_vm0, %v2102_v38  ;;  %v2103_v41 = vmax.f32 %v2055_v39, 0.0 }
 0x70a   : > { %2121 = vst.msk [vmem:[%s3103_s21 + $0x38] sm:$0xff] %vm639_vm0, %v2105_v40 }
 0x70b   : > { %2119 = vst.msk [vmem:[%s3103_s21 + $0x28] sm:$0xff] %vm639_vm0, %v2103_v41  ;;  %v2639_v42 = vpop.f32.mrb[52].mxu1 }
 0x70c   : > { %v2076_v43 = vadd.f32 %v2639_v42, %v2268_v17  ;;  %v2067_v44 = vpop.f32.mrb[53].mxu1 }
 0x70d   : > { %v2068_v45 = vadd.f32 %v2268_v17, %v2067_v44  ;;  %v2640_v46 = vpop.f32.mrb[54].mxu1 }
 0x70e   : > { %v2108_v47 = vmax.f32 %v2076_v43, 0.0  ;;  %v2079_v48 = vadd.f32 %v2640_v46, %v2268_v17  ;;  %v2070_v49 = vpop.f32.mrb[55].mxu1 }
 0x70f   : > { %v2106_v50 = vmax.f32 %v2068_v45, 0.0  ;;  %v2071_v51 = vadd.f32 %v2268_v17, %v2070_v49 }
 0x710   : > { %2124 = vst.msk [vmem:[%s3103_s21 + $0x50] sm:$0xff] %vm639_vm0, %v2108_v47  ;;  %v2109_v52 = vmax.f32 %v2079_v48, 0.0 }
 0x711   : > { %2122 = vst.msk [vmem:[%s3103_s21 + $0x40] sm:$0xff] %vm639_vm0, %v2106_v50  ;;  %v2107_v53 = vmax.f32 %v2071_v51, 0.0 }
 0x712   : > { %2125 = vst.msk [vmem:[%s3103_s21 + $0x58] sm:$0xff] %vm639_vm0, %v2109_v52 }
 0x713   : > { %2123 = vst.msk [vmem:[%s3103_s21 + $0x48] sm:$0xff] %vm639_vm0, %v2107_v53  ;;  %v2643_v54 = vpop.f32.mrb[56].mxu1 }
 0x714   : > { %v2092_v55 = vadd.f32 %v2643_v54, %v2268_v17  ;;  %v2083_v56 = vpop.f32.mrb[57].mxu1 }
 0x715   : > { %v2084_v57 = vadd.f32 %v2268_v17, %v2083_v56  ;;  %v2644_v58 = vpop.f32.mrb[58].mxu1 }
 0x716   : > { %v2112_v59 = vmax.f32 %v2092_v55, 0.0  ;;  %v2095_v60 = vadd.f32 %v2644_v58, %v2268_v17  ;;  %v2086_v61 = vpop.f32.mrb[59].mxu1 }
 0x717   : > { %v2110_v62 = vmax.f32 %v2084_v57, 0.0  ;;  %v2087_v63 = vadd.f32 %v2268_v17, %v2086_v61 }
 0x718   : > { %2128 = vst.msk [vmem:[%s3103_s21 + $0x70] sm:$0xff] %vm639_vm0, %v2112_v59  ;;  %v2113_v0 = vmax.f32 %v2095_v60, 0.0 }
 0x719   : > { %2126 = vst.msk [vmem:[%s3103_s21 + $0x60] sm:$0xff] %vm639_vm0, %v2110_v62  ;;  %v2111_v1 = vmax.f32 %v2087_v63, 0.0 }
 0x71a   : > { %2129 = vst.msk [vmem:[%s3103_s21 + $0x78] sm:$0xff] %vm639_vm0, %v2113_v0 }
 0x71b   : > { %2127 = vst.msk [vmem:[%s3103_s21 + $0x68] sm:$0xff] %vm639_vm0, %v2111_v1 }
 0x71c PF: > { %s27_s24 = sadd.s32 1, %s2741_s24  }
 0x71d   : > { %p24_p4 = scmp.ge.s32.totalorder %s27_s24, 5  }
 0x71f   :  { %26 = sbr.rel (!%p24_p4) target bundleno = 3 (0x3), region = 118 }

</bundles_post_ra>
